<compile_context>
chip_gen: v7x
topology: tpu7x:2x2x1
jax: 0.10.0
libtpu: 0.0.40
codegen_flags: <defaults>
</compile_context>

<pallas_src>
import functools

import jax
import jax.numpy as jnp
from jax.experimental import pallas as pl
from jax.experimental.pallas import tpu as pltpu

EPS = 1e-5


def _round_up(x, m):
    return ((x + m - 1) // m) * m


def _physical_vmem_bytes():
    """Generation-aware VMEM capacity (v5e/v6e: 128 MiB, v7x: 64 MiB)."""
    try:
        return int(pltpu.get_tpu_info().vmem_capacity_bytes)
    except Exception:
        return 64 * 1024 * 1024  # conservative (v7x)


def _default_fuse_fc3():
    """Block-diagonal fc3 fusion helps on >= v6e (256x256 MXU); hurts on v5e."""
    try:
        kind = jax.devices()[0].device_kind.lower()
    except Exception:
        return True
    for old in ("v2", "v3", "v4", "v5"):
        if old in kind:
            return False
    return True


# ---------------------------------------------------------------------------
# Kernel
# ---------------------------------------------------------------------------
def _intactnet_kernel(idxs_ref,      # SMEM [B] int32        (scalar prefetch)
                      feat_ref,      # VMEM [ndata, hdim]  or  HBM (pl.ANY)
                      w1_ref,        # VMEM [hdim, 2*Hp]        compute dtype
                      vecs_ref,      # VMEM [3, 2*Hp] f32   rows: b1, gamma, beta
                      w3_ref,        # VMEM [2*Hp, 2*hdim] (fused) or [2, Hp, hdim]
                      b3_ref,        # VMEM [2, hdim] f32   rows: b3a, b3b
                      img_ref,       # VMEM [B, hdim] f32
                      pnt_ref,       # VMEM [B, hdim] f32
                      xbuf,          # VMEM scratch [B, hdim]  (features dtype)
                      *dma_sem,      # optional single DMA semaphore (HBM path)
                      features_in_vmem):
    B = xbuf.shape[0]
    hdim = img_ref.shape[1]
    Hp = w1_ref.shape[1] // 2

    # ---- embedding gather: features[idxs] -> xbuf --------------------------
    if features_in_vmem:
        # Table resident in VMEM (one bulk DMA done by the Pallas pipeline):
        # per-row gather is plain dynamic sublane indexing, no DMA descriptors.
        for i in range(B):
            xbuf[pl.ds(i, 1), :] = feat_ref[pl.ds(idxs_ref[i], 1), :]
    else:
        # Large table stays in HBM: B row DMAs sharing ONE semaphore.
        sem = dma_sem[0]
        copies = []
        for i in range(B):
            cp = pltpu.make_async_copy(
                feat_ref.at[pl.ds(idxs_ref[i], 1)],   # (1, hdim) row in HBM
                xbuf.at[pl.ds(i, 1)],                 # (1, hdim) row in VMEM
                sem.at[0])
            cp.start()
            copies.append(cp)
        for cp in copies:                             # equal-sized copies ->
            cp.wait()                                 # B waits on the one sem

    x = xbuf[...].astype(w1_ref.dtype)

    # ---- fc1 of BOTH branches as one matmul (lane axis = 2*Hp) -------------
    h = jnp.dot(x, w1_ref[...], preferred_element_type=jnp.float32)
    vecs = vecs_ref[...]
    h = h + vecs[0:1, :]                              # fc1 bias (both branches)

    # ---- BatchNorm1d (training-mode batch stats), affine folded ------------
    mean = jnp.mean(h, axis=0, keepdims=True)
    var = jnp.mean((h - mean) ** 2, axis=0, keepdims=True)
    scale = vecs[1:2, :] * jax.lax.rsqrt(var + EPS)   # gamma / sqrt(var + eps)
    shift = vecs[2:3, :] - mean * scale               # beta - mean * scale
    h = jnp.maximum(h * scale + shift, 0.0).astype(w3_ref.dtype)   # + ReLU

    # ---- fc3 -> two direct lane-dense [B, hdim] outputs ---------------------
    if len(w3_ref.shape) == 2:
        # Block-diagonal fused fc3: one [B, 2Hp] @ [2Hp, 2*hdim] MXU pass.
        y = jnp.dot(h, w3_ref[...], preferred_element_type=jnp.float32)
        img_ref[...] = (y[:, :hdim] + b3_ref[0:1, :]).astype(img_ref.dtype)
        pnt_ref[...] = (y[:, hdim:] + b3_ref[1:2, :]).astype(pnt_ref.dtype)
    else:
        # Two matmuls (v5e path: 128x128 MXUs).
        img = jnp.dot(h[:, :Hp], w3_ref[0], preferred_element_type=jnp.float32)
        pnt = jnp.dot(h[:, Hp:], w3_ref[1], preferred_element_type=jnp.float32)
        img_ref[...] = (img + b3_ref[0:1, :]).astype(img_ref.dtype)
        pnt_ref[...] = (pnt + b3_ref[1:2, :]).astype(pnt_ref.dtype)


# ---------------------------------------------------------------------------
# One-time operand packing (keep OUT of the per-call jitted forward)
# ---------------------------------------------------------------------------
def pack_params(features, params, compute_dtype=jnp.float32, fuse_fc3=None):
    """Pack / pad / cast all weights once.

    * fc1 weights of both branches concatenated -> [hdim, 2*Hp]
    * b1 / gamma / beta stacked -> [3, 2*Hp] f32
    * fc3 either block-diagonal [2*Hp, 2*hdim] (fuse_fc3) or stacked [2, Hp, hdim]
    * fc3 biases stacked -> [2, hdim] f32
    * hidden padded to Hp = round_up(hidden, 128) with zero w1 columns,
      zero b1 / gamma / beta and zero w3 rows: padded lanes are exactly zero
      after BN + ReLU and multiply zero fc3 rows, so results are exact.
    * features and matmul operands pre-cast to compute_dtype.
    """
    if fuse_fc3 is None:
        fuse_fc3 = _default_fuse_fc3()
    hidden = params["w1a"].shape[1]
    hdim = features.shape[1]
    Hp = _round_up(max(hidden, 128), 128)
    pad = Hp - hidden

    pad_cols = lambda a: jnp.pad(a, ((0, 0), (0, pad)))   # [*, hidden] -> [*, Hp]
    pad_rows = lambda a: jnp.pad(a, ((0, pad), (0, 0)))   # [hidden, *] -> [Hp, *]

    w1 = jnp.concatenate([pad_cols(params["w1a"]), pad_cols(params["w1b"])],
                         axis=1).astype(compute_dtype)                  # [hdim, 2Hp]
    vecs = jnp.concatenate([
        jnp.concatenate([pad_cols(params["b1a"]), pad_cols(params["b1b"])], axis=1),
        jnp.concatenate([pad_cols(params["ga"]),  pad_cols(params["gb"])],  axis=1),
        jnp.concatenate([pad_cols(params["bta"]), pad_cols(params["btb"])], axis=1),
    ], axis=0).astype(jnp.float32)                                      # [3, 2Hp]

    w3a = pad_rows(params["w3a"])
    w3b = pad_rows(params["w3b"])
    if fuse_fc3:
        zero = jnp.zeros((Hp, hdim), w3a.dtype)
        w3 = jnp.concatenate(
            [jnp.concatenate([w3a, zero], axis=1),
             jnp.concatenate([zero, w3b], axis=1)],
            axis=0).astype(compute_dtype)                               # [2Hp, 2*hdim]
    else:
        w3 = jnp.stack([w3a, w3b], axis=0).astype(compute_dtype)       # [2, Hp, hdim]

    b3 = jnp.concatenate([params["b3a"], params["b3b"]],
                         axis=0).astype(jnp.float32)                    # [2, hdim]

    feats = features.astype(compute_dtype)
    return dict(features=feats, w1=w1, vecs=vecs, w3=w3, b3=b3)


# ---------------------------------------------------------------------------
# Forward
# ---------------------------------------------------------------------------
@functools.partial(jax.jit, static_argnames=("features_resident",))
def _intactnet_forward_jit(packed, idxs, features_resident):
    feats = packed["features"]
    w1, vecs, w3, b3 = packed["w1"], packed["vecs"], packed["w3"], packed["b3"]
    ndata, hdim = feats.shape
    B = idxs.shape[0]
    twoHp = w1.shape[1]

    vmem_bytes = (w1.size * w1.dtype.itemsize
                  + vecs.size * vecs.dtype.itemsize
                  + w3.size * w3.dtype.itemsize
                  + b3.size * b3.dtype.itemsize
                  + B * hdim * feats.dtype.itemsize          # gathered x
                  + 2 * B * hdim * 4)                        # two f32 outputs
    if features_resident:
        vmem_bytes += feats.size * feats.dtype.itemsize      # resident table
    phys = _physical_vmem_bytes()
    vmem_limit = int(min(phys, max(16 * 1024 * 1024, 4 * vmem_bytes)))

    flops = 2 * B * hdim * twoHp                             # fused fc1
    if w3.ndim == 2:
        flops += 2 * B * w3.shape[0] * w3.shape[1]           # block-diag fc3
    else:
        flops += 2 * (2 * B * w3.shape[1] * w3.shape[2])     # two fc3 matmuls
    flops += 8 * B * twoHp                                   # BN / ReLU
    bytes_accessed = int(vmem_bytes + B * hdim * feats.dtype.itemsize
                         + idxs.size * 4)

    feat_space = (pltpu.MemorySpace.VMEM if features_resident else pl.ANY)
    scratch_shapes = [pltpu.VMEM((B, hdim), feats.dtype)]    # gathered x
    if not features_resident:
        scratch_shapes.append(pltpu.SemaphoreType.DMA((1,)))  # shared gather sem

    grid_spec = pltpu.PrefetchScalarGridSpec(
        num_scalar_prefetch=1,                               # idxs -> SMEM
        grid=(1,),
        in_specs=[
            pl.BlockSpec(memory_space=feat_space),                   # features
            pl.BlockSpec(memory_space=pltpu.MemorySpace.VMEM),       # w1
            pl.BlockSpec(memory_space=pltpu.MemorySpace.VMEM),       # vecs
            pl.BlockSpec(memory_space=pltpu.MemorySpace.VMEM),       # w3
            pl.BlockSpec(memory_space=pltpu.MemorySpace.VMEM),       # b3
        ],
        out_specs=(pl.BlockSpec(memory_space=pltpu.MemorySpace.VMEM),
                   pl.BlockSpec(memory_space=pltpu.MemorySpace.VMEM)),
        scratch_shapes=scratch_shapes,
    )

    img, pnt = pl.pallas_call(
        functools.partial(_intactnet_kernel, features_in_vmem=features_resident),
        grid_spec=grid_spec,
        out_shape=(jax.ShapeDtypeStruct((B, hdim), jnp.float32),
                   jax.ShapeDtypeStruct((B, hdim), jnp.float32)),
        compiler_params=pltpu.CompilerParams(
            dimension_semantics=("arbitrary",),
            vmem_limit_bytes=vmem_limit),
        cost_estimate=pl.CostEstimate(
            flops=int(flops),
            transcendentals=int(twoHp),
            bytes_accessed=bytes_accessed),
    )(idxs, feats, w1, vecs, w3, b3)
    return img, pnt


def intactnet_forward(packed, idxs, features_resident=None):
    """packed: output of pack_params(); idxs: [B] int32 indices (0 <= idx < ndata)."""
    feats = packed["features"]
    if features_resident is None:
        table_bytes = feats.size * feats.dtype.itemsize
        features_resident = table_bytes <= _physical_vmem_bytes() // 4
    return _intactnet_forward_jit(packed, jnp.asarray(idxs, jnp.int32),
                                  features_resident=bool(features_resident))


# ---------------------------------------------------------------------------
# Init + pure-JAX reference (matches the PyTorch module, training-mode BN)
# ---------------------------------------------------------------------------
def init_params(key, ndata, hidden, hdim):
    """Deterministic init mimicking the PyTorch module's shapes.
    Linear weights are stored as [in_dim, out_dim] (transpose of nn.Linear)."""
    ks = jax.random.split(key, 9)
    feats = jax.random.normal(ks[0], (ndata, hdim), jnp.float32)

    def linear(kw, kb, fan_in, fan_out):
        bound = 1.0 / (fan_in ** 0.5)
        w = jax.random.uniform(kw, (fan_in, fan_out), jnp.float32, -bound, bound)
        b = jax.random.uniform(kb, (1, fan_out), jnp.float32, -bound, bound)
        return w, b

    w1a, b1a = linear(ks[1], ks[2], hdim, hidden)
    w3a, b3a = linear(ks[3], ks[4], hidden, hdim)
    w1b, b1b = linear(ks[5], ks[6], hdim, hidden)
    w3b, b3b = linear(ks[7], ks[8], hidden, hdim)

    params = dict(
        w1a=w1a, b1a=b1a, ga=jnp.ones((1, hidden), jnp.float32),
        bta=jnp.zeros((1, hidden), jnp.float32), w3a=w3a, b3a=b3a,
        w1b=w1b, b1b=b1b, gb=jnp.ones((1, hidden), jnp.float32),
        btb=jnp.zeros((1, hidden), jnp.float32), w3b=w3b, b3b=b3b,
    )
    return feats, params


def reference_forward(features, idxs, params):
    x = jnp.take(features, idxs, axis=0)

    def branch(x, w1, b1, g, bt, w3, b3):
        h = x @ w1 + b1
        mean = jnp.mean(h, axis=0, keepdims=True)
        var = jnp.mean((h - mean) ** 2, axis=0, keepdims=True)
        h = (h - mean) / jnp.sqrt(var + EPS) * g + bt
        h = jnp.maximum(h, 0.0)
        return h @ w3 + b3

    img = branch(x, params["w1a"], params["b1a"], params["ga"], params["bta"],
                 params["w3a"], params["b3a"])
    pnt = branch(x, params["w1b"], params["b1b"], params["gb"], params["btb"],
                 params["w3b"], params["b3b"])
    return img, pnt


if __name__ == "__main__":
    # Real module defaults: hidden=216, hdim=128.  hidden=216 is padded to 256
    # inside pack_params (numerically exact), so the true module shape is used.
    ndata, hidden, hdim, B = 32, 216, 128, 8

    key = jax.random.PRNGKey(0)
    kp, ki = jax.random.split(key)
    features, params = init_params(kp, ndata, hidden, hdim)
    idxs = jax.random.randint(ki, (B,), 0, ndata, dtype=jnp.int32)

    img_ref, pnt_ref = reference_forward(features, idxs, params)

    # 1) f32, VMEM-resident table, block-diagonal fc3 (v6e/v7x-style).
    packed = pack_params(features, params, compute_dtype=jnp.float32,
                         fuse_fc3=True)
    img, pnt = intactnet_forward(packed, idxs)
    jax.block_until_ready((img, pnt))
    assert jnp.allclose(img, img_ref, atol=1e-3, rtol=1e-3)
    assert jnp.allclose(pnt, pnt_ref, atol=1e-3, rtol=1e-3)

    # 2) f32, two-matmul fc3 (v5e-style) + HBM row-DMA gather fallback path.
    packed_v5 = pack_params(features, params, compute_dtype=jnp.float32,
                            fuse_fc3=False)
    img2, pnt2 = intactnet_forward(packed_v5, idxs, features_resident=False)
    jax.block_until_ready((img2, pnt2))
    assert jnp.allclose(img2, img_ref, atol=1e-3, rtol=1e-3)
    assert jnp.allclose(pnt2, pnt_ref, atol=1e-3, rtol=1e-3)

    # 3) bf16 matmul inputs (f32 accumulation; BN stats computed from
    #    bf16-input matmuls by design), resident table.
    packed16 = pack_params(features, params, compute_dtype=jnp.bfloat16)
    img16, pnt16 = intactnet_forward(packed16, idxs)
    jax.block_until_ready((img16, pnt16))
    assert jnp.allclose(img16, img_ref, atol=1e-1, rtol=1e-1)
    assert jnp.allclose(pnt16, pnt_ref, atol=1e-1, rtol=1e-1)

    print("KERNEL_OK")
</pallas_src>

<mosaic_0001>
module attributes {stable_mosaic.version = 11 : i64} {
  func.func @_intactnet_kernel(%arg0: i32, %arg1: memref<8xi32, #tpu.memory_space<smem>>, %arg2: memref<32x128xf32, #tpu.memory_space<vmem>>, %arg3: memref<128x512xf32, #tpu.memory_space<vmem>>, %arg4: memref<3x512xf32, #tpu.memory_space<vmem>>, %arg5: memref<512x256xf32, #tpu.memory_space<vmem>>, %arg6: memref<2x128xf32, #tpu.memory_space<vmem>>, %arg7: memref<8x128xf32, #tpu.memory_space<vmem>>, %arg8: memref<8x128xf32, #tpu.memory_space<vmem>>, %arg9: memref<8x128xf32, #tpu.memory_space<vmem>>) attributes {dimension_semantics = [#tpu.dimension_semantics<arbitrary>], iteration_bounds = array<i64: 1>, scalar_prefetch = 1 : i64, scratch_operands = 1 : i64, tpu.core_type = #tpu.core_type<tc>, window_params = [{pipeline_mode = #tpu.pipeline_mode<synchronous>, transform_indices = @transform_0, window_bounds = array<i64: 32, 128>}, {pipeline_mode = #tpu.pipeline_mode<synchronous>, transform_indices = @transform_1, window_bounds = array<i64: 128, 512>}, {pipeline_mode = #tpu.pipeline_mode<synchronous>, transform_indices = @transform_2, window_bounds = array<i64: 3, 512>}, {pipeline_mode = #tpu.pipeline_mode<synchronous>, transform_indices = @transform_3, window_bounds = array<i64: 512, 256>}, {pipeline_mode = #tpu.pipeline_mode<synchronous>, transform_indices = @transform_4, window_bounds = array<i64: 2, 128>}, {pipeline_mode = #tpu.pipeline_mode<synchronous>, transform_indices = @transform_5, window_bounds = array<i64: 8, 128>}, {pipeline_mode = #tpu.pipeline_mode<synchronous>, transform_indices = @transform_6, window_bounds = array<i64: 8, 128>}]} {
    %c0 = arith.constant 0 : index
    %0 = memref.load %arg1[%c0] : memref<8xi32, #tpu.memory_space<smem>>
    %1 = arith.index_cast %0 : i32 to index
    %c0_0 = arith.constant 0 : index
    %2 = vector.load %arg2[%1, %c0_0] : memref<32x128xf32, #tpu.memory_space<vmem>>, vector<1x128xf32>
    %c0_1 = arith.constant 0 : index
    %c0_2 = arith.constant 0 : index
    %3 = vector.load %arg9[%c0_1, %c0_2] : memref<8x128xf32, #tpu.memory_space<vmem>>, vector<1x128xf32>
    tpu.vector_store %arg9[%c0_1, %c0_2], %2 {strides = array<i32>} : memref<8x128xf32, #tpu.memory_space<vmem>>, vector<1x128xf32>,
    %c1 = arith.constant 1 : index
    %4 = memref.load %arg1[%c1] : memref<8xi32, #tpu.memory_space<smem>>
    %5 = arith.index_cast %4 : i32 to index
    %c0_3 = arith.constant 0 : index
    %6 = vector.load %arg2[%5, %c0_3] : memref<32x128xf32, #tpu.memory_space<vmem>>, vector<1x128xf32>
    %c1_4 = arith.constant 1 : index
    %c0_5 = arith.constant 0 : index
    %7 = vector.load %arg9[%c1_4, %c0_5] : memref<8x128xf32, #tpu.memory_space<vmem>>, vector<1x128xf32>
    tpu.vector_store %arg9[%c1_4, %c0_5], %6 {strides = array<i32>} : memref<8x128xf32, #tpu.memory_space<vmem>>, vector<1x128xf32>,
    %c2 = arith.constant 2 : index
    %8 = memref.load %arg1[%c2] : memref<8xi32, #tpu.memory_space<smem>>
    %9 = arith.index_cast %8 : i32 to index
    %c0_6 = arith.constant 0 : index
    %10 = vector.load %arg2[%9, %c0_6] : memref<32x128xf32, #tpu.memory_space<vmem>>, vector<1x128xf32>
    %c2_7 = arith.constant 2 : index
    %c0_8 = arith.constant 0 : index
    %11 = vector.load %arg9[%c2_7, %c0_8] : memref<8x128xf32, #tpu.memory_space<vmem>>, vector<1x128xf32>
    tpu.vector_store %arg9[%c2_7, %c0_8], %10 {strides = array<i32>} : memref<8x128xf32, #tpu.memory_space<vmem>>, vector<1x128xf32>,
    %c3 = arith.constant 3 : index
    %12 = memref.load %arg1[%c3] : memref<8xi32, #tpu.memory_space<smem>>
    %13 = arith.index_cast %12 : i32 to index
    %c0_9 = arith.constant 0 : index
    %14 = vector.load %arg2[%13, %c0_9] : memref<32x128xf32, #tpu.memory_space<vmem>>, vector<1x128xf32>
    %c3_10 = arith.constant 3 : index
    %c0_11 = arith.constant 0 : index
    %15 = vector.load %arg9[%c3_10, %c0_11] : memref<8x128xf32, #tpu.memory_space<vmem>>, vector<1x128xf32>
    tpu.vector_store %arg9[%c3_10, %c0_11], %14 {strides = array<i32>} : memref<8x128xf32, #tpu.memory_space<vmem>>, vector<1x128xf32>,
    %c4 = arith.constant 4 : index
    %16 = memref.load %arg1[%c4] : memref<8xi32, #tpu.memory_space<smem>>
    %17 = arith.index_cast %16 : i32 to index
    %c0_12 = arith.constant 0 : index
    %18 = vector.load %arg2[%17, %c0_12] : memref<32x128xf32, #tpu.memory_space<vmem>>, vector<1x128xf32>
    %c4_13 = arith.constant 4 : index
    %c0_14 = arith.constant 0 : index
    %19 = vector.load %arg9[%c4_13, %c0_14] : memref<8x128xf32, #tpu.memory_space<vmem>>, vector<1x128xf32>
    tpu.vector_store %arg9[%c4_13, %c0_14], %18 {strides = array<i32>} : memref<8x128xf32, #tpu.memory_space<vmem>>, vector<1x128xf32>,
    %c5 = arith.constant 5 : index
    %20 = memref.load %arg1[%c5] : memref<8xi32, #tpu.memory_space<smem>>
    %21 = arith.index_cast %20 : i32 to index
    %c0_15 = arith.constant 0 : index
    %22 = vector.load %arg2[%21, %c0_15] : memref<32x128xf32, #tpu.memory_space<vmem>>, vector<1x128xf32>
    %c5_16 = arith.constant 5 : index
    %c0_17 = arith.constant 0 : index
    %23 = vector.load %arg9[%c5_16, %c0_17] : memref<8x128xf32, #tpu.memory_space<vmem>>, vector<1x128xf32>
    tpu.vector_store %arg9[%c5_16, %c0_17], %22 {strides = array<i32>} : memref<8x128xf32, #tpu.memory_space<vmem>>, vector<1x128xf32>,
    %c6 = arith.constant 6 : index
    %24 = memref.load %arg1[%c6] : memref<8xi32, #tpu.memory_space<smem>>
    %25 = arith.index_cast %24 : i32 to index
    %c0_18 = arith.constant 0 : index
    %26 = vector.load %arg2[%25, %c0_18] : memref<32x128xf32, #tpu.memory_space<vmem>>, vector<1x128xf32>
    %c6_19 = arith.constant 6 : index
    %c0_20 = arith.constant 0 : index
    %27 = vector.load %arg9[%c6_19, %c0_20] : memref<8x128xf32, #tpu.memory_space<vmem>>, vector<1x128xf32>
    tpu.vector_store %arg9[%c6_19, %c0_20], %26 {strides = array<i32>} : memref<8x128xf32, #tpu.memory_space<vmem>>, vector<1x128xf32>,
    %c7 = arith.constant 7 : index
    %28 = memref.load %arg1[%c7] : memref<8xi32, #tpu.memory_space<smem>>
    %29 = arith.index_cast %28 : i32 to index
    %c0_21 = arith.constant 0 : index
    %30 = vector.load %arg2[%29, %c0_21] : memref<32x128xf32, #tpu.memory_space<vmem>>, vector<1x128xf32>
    %c7_22 = arith.constant 7 : index
    %c0_23 = arith.constant 0 : index
    %31 = vector.load %arg9[%c7_22, %c0_23] : memref<8x128xf32, #tpu.memory_space<vmem>>, vector<1x128xf32>
    tpu.vector_store %arg9[%c7_22, %c0_23], %30 {strides = array<i32>} : memref<8x128xf32, #tpu.memory_space<vmem>>, vector<1x128xf32>,
    %c0_24 = arith.constant 0 : index
    %c0_25 = arith.constant 0 : index
    %32 = vector.load %arg9[%c0_24, %c0_25] : memref<8x128xf32, #tpu.memory_space<vmem>>, vector<8x128xf32>
    %c0_26 = arith.constant 0 : index
    %c0_27 = arith.constant 0 : index
    %33 = vector.load %arg3[%c0_26, %c0_27] : memref<128x512xf32, #tpu.memory_space<vmem>>, vector<128x512xf32>
    %cst = arith.constant dense<0.000000e+00> : vector<8x512xf32>
    %34 = tpu.matmul %32, %33, %cst {dimension_numbers = #tpu.dot_dimension_numbers<[1], [0], [0], [1], [0, 0, 1, 1], [], []>} : vector<8x128xf32>, vector<128x512xf32>, vector<8x512xf32> -> vector<8x512xf32>
    %c0_28 = arith.constant 0 : index
    %c0_29 = arith.constant 0 : index
    %35 = vector.load %arg4[%c0_28, %c0_29] : memref<3x512xf32, #tpu.memory_space<vmem>>, vector<3x512xf32>
    %36 = vector.extract_strided_slice %35 {offsets = [0, 0], sizes = [1, 512], strides = [1, 1]} : vector<3x512xf32> to vector<1x512xf32>
    %37 = vector.broadcast %36 : vector<1x512xf32> to vector<8x512xf32>
    %38 = arith.addf %34, %37 : vector<8x512xf32>
    %cst_30 = arith.constant dense<0.000000e+00> : vector<512xf32>
    %39 = vector.multi_reduction <add>, %38, %cst_30 [0] : vector<8x512xf32> to vector<512xf32>
    %40 = vector.shape_cast %39 : vector<512xf32> to vector<1x512xf32>
    %cst_31 = arith.constant 8.000000e+00 : f32
    %41 = vector.broadcast %cst_31 : f32 to vector<1x512xf32>
    %42 = arith.divf %40, %41 : vector<1x512xf32>
    %43 = vector.broadcast %42 : vector<1x512xf32> to vector<8x512xf32>
    %44 = arith.subf %38, %43 : vector<8x512xf32>
    %45 = arith.mulf %44, %44 : vector<8x512xf32>
    %cst_32 = arith.constant dense<0.000000e+00> : vector<512xf32>
    %46 = vector.multi_reduction <add>, %45, %cst_32 [0] : vector<8x512xf32> to vector<512xf32>
    %47 = vector.shape_cast %46 : vector<512xf32> to vector<1x512xf32>
    %cst_33 = arith.constant 8.000000e+00 : f32
    %48 = vector.broadcast %cst_33 : f32 to vector<1x512xf32>
    %49 = arith.divf %47, %48 : vector<1x512xf32>
    %50 = vector.extract_strided_slice %35 {offsets = [1, 0], sizes = [1, 512], strides = [1, 1]} : vector<3x512xf32> to vector<1x512xf32>
    %cst_34 = arith.constant 9.99999974E-6 : f32
    %51 = vector.broadcast %cst_34 : f32 to vector<1x512xf32>
    %52 = arith.addf %49, %51 : vector<1x512xf32>
    %53 = math.rsqrt %52 : vector<1x512xf32>
    %54 = arith.mulf %50, %53 : vector<1x512xf32>
    %55 = vector.extract_strided_slice %35 {offsets = [2, 0], sizes = [1, 512], strides = [1, 1]} : vector<3x512xf32> to vector<1x512xf32>
    %56 = arith.mulf %42, %54 : vector<1x512xf32>
    %57 = arith.subf %55, %56 : vector<1x512xf32>
    %58 = vector.broadcast %54 : vector<1x512xf32> to vector<8x512xf32>
    %59 = arith.mulf %38, %58 : vector<8x512xf32>
    %60 = vector.broadcast %57 : vector<1x512xf32> to vector<8x512xf32>
    %61 = arith.addf %59, %60 : vector<8x512xf32>
    %cst_35 = arith.constant 0.000000e+00 : f32
    %62 = vector.broadcast %cst_35 : f32 to vector<8x512xf32>
    %63 = arith.maximumf %61, %62 : vector<8x512xf32>
    %c0_36 = arith.constant 0 : index
    %c0_37 = arith.constant 0 : index
    %64 = vector.load %arg5[%c0_36, %c0_37] : memref<512x256xf32, #tpu.memory_space<vmem>>, vector<512x256xf32>
    %cst_38 = arith.constant dense<0.000000e+00> : vector<8x256xf32>
    %65 = tpu.matmul %63, %64, %cst_38 {dimension_numbers = #tpu.dot_dimension_numbers<[1], [0], [0], [1], [0, 0, 1, 1], [], []>} : vector<8x512xf32>, vector<512x256xf32>, vector<8x256xf32> -> vector<8x256xf32>
    %66 = vector.extract_strided_slice %65 {offsets = [0, 0], sizes = [8, 128], strides = [1, 1]} : vector<8x256xf32> to vector<8x128xf32>
    %c0_39 = arith.constant 0 : index
    %c0_40 = arith.constant 0 : index
    %67 = vector.load %arg6[%c0_39, %c0_40] : memref<2x128xf32, #tpu.memory_space<vmem>>, vector<1x128xf32>
    %68 = vector.broadcast %67 : vector<1x128xf32> to vector<8x128xf32>
    %69 = arith.addf %66, %68 : vector<8x128xf32>
    %c0_41 = arith.constant 0 : index
    %c0_42 = arith.constant 0 : index
    %70 = vector.load %arg7[%c0_41, %c0_42] : memref<8x128xf32, #tpu.memory_space<vmem>>, vector<8x128xf32>
    tpu.vector_store %arg7[%c0_41, %c0_42], %69 {strides = array<i32>} : memref<8x128xf32, #tpu.memory_space<vmem>>, vector<8x128xf32>,
    %71 = vector.extract_strided_slice %65 {offsets = [0, 128], sizes = [8, 128], strides = [1, 1]} : vector<8x256xf32> to vector<8x128xf32>
    %c1_43 = arith.constant 1 : index
    %c0_44 = arith.constant 0 : index
    %72 = vector.load %arg6[%c1_43, %c0_44] : memref<2x128xf32, #tpu.memory_space<vmem>>, vector<1x128xf32>
    %73 = vector.broadcast %72 : vector<1x128xf32> to vector<8x128xf32>
    %74 = arith.addf %71, %73 : vector<8x128xf32>
    %c0_45 = arith.constant 0 : index
    %c0_46 = arith.constant 0 : index
    %75 = vector.load %arg8[%c0_45, %c0_46] : memref<8x128xf32, #tpu.memory_space<vmem>>, vector<8x128xf32>
    tpu.vector_store %arg8[%c0_45, %c0_46], %74 {strides = array<i32>} : memref<8x128xf32, #tpu.memory_space<vmem>>, vector<8x128xf32>,
    return
  }
  func.func @transform_0(%arg0: i32, %arg1: memref<8xi32, #tpu.memory_space<smem>>) -> (i32, i32) {
    %c0_i32 = arith.constant 0 : i32
    %c0_i32_0 = arith.constant 0 : i32
    %c0_i32_1 = arith.constant 0 : i32
    return %c0_i32, %c0_i32_0 : i32, i32
  }
  func.func @transform_1(%arg0: i32, %arg1: memref<8xi32, #tpu.memory_space<smem>>) -> (i32, i32) {
    %c0_i32 = arith.constant 0 : i32
    %c0_i32_0 = arith.constant 0 : i32
    %c0_i32_1 = arith.constant 0 : i32
    return %c0_i32, %c0_i32_0 : i32, i32
  }
  func.func @transform_2(%arg0: i32, %arg1: memref<8xi32, #tpu.memory_space<smem>>) -> (i32, i32) {
    %c0_i32 = arith.constant 0 : i32
    %c0_i32_0 = arith.constant 0 : i32
    %c0_i32_1 = arith.constant 0 : i32
    return %c0_i32, %c0_i32_0 : i32, i32
  }
  func.func @transform_3(%arg0: i32, %arg1: memref<8xi32, #tpu.memory_space<smem>>) -> (i32, i32) {
    %c0_i32 = arith.constant 0 : i32
    %c0_i32_0 = arith.constant 0 : i32
    %c0_i32_1 = arith.constant 0 : i32
    return %c0_i32, %c0_i32_0 : i32, i32
  }
  func.func @transform_4(%arg0: i32, %arg1: memref<8xi32, #tpu.memory_space<smem>>) -> (i32, i32) {
    %c0_i32 = arith.constant 0 : i32
    %c0_i32_0 = arith.constant 0 : i32
    %c0_i32_1 = arith.constant 0 : i32
    return %c0_i32, %c0_i32_0 : i32, i32
  }
  func.func @transform_5(%arg0: i32, %arg1: memref<8xi32, #tpu.memory_space<smem>>) -> (i32, i32) {
    %c0_i32 = arith.constant 0 : i32
    %c0_i32_0 = arith.constant 0 : i32
    %c0_i32_1 = arith.constant 0 : i32
    return %c0_i32, %c0_i32_0 : i32, i32
  }
  func.func @transform_6(%arg0: i32, %arg1: memref<8xi32, #tpu.memory_space<smem>>) -> (i32, i32) {
    %c0_i32 = arith.constant 0 : i32
    %c0_i32_0 = arith.constant 0 : i32
    %c0_i32_1 = arith.constant 0 : i32
    return %c0_i32, %c0_i32_0 : i32, i32
  }
}

</mosaic_0001>

<bundles_post_ra>
// kernel: _intactnet_forward_jit.1
= control target key start
LH: loop header
LB: loop body
LE: loop exit
PB: predicated region body
PF: predicated region fallthrough
CT: control target
= control target key end

     0   :  { %s1516_s0 = inlined_call_operand.vmem [shape: s32[8], index: 0, kind: input, shape index: {}]   ;;  %s1517_s1 = inlined_call_operand.hbm [shape: f32[32,128], index: 1, kind: input, shape index: {}]   ;;  %s1518_s2 = inlined_call_operand.hbm [shape: f32[128,512], index: 2, kind: input, shape index: {}]   ;;  %s1519_s3 = inlined_call_operand.hbm [shape: f32[3,512], index: 3, kind: input, shape index: {}]   ;;  %s1520_s4 = inlined_call_operand.hbm [shape: f32[512,256], index: 4, kind: input, shape index: {}]   ;;  %s1521_s5 = inlined_call_operand.hbm [shape: f32[2,128], index: 5, kind: input, shape index: {}]   ;;  %s1522_s6 = inlined_call_operand.hbm [shape: f32[8,128], index: 6, kind: output, shape index: {0}]   ;;  %s1523_s7 = inlined_call_operand.hbm [shape: f32[8,128], index: 7, kind: output, shape index: {1}]  }
   0x1   :  { %s13_s26 = sshll.u32 %s1516_s0, 4  ;;  %s14_s26 = int_to_ptr.vmem [resolvable:$true] %s13_s26 }
   0x2   :  { %s1112_s27 = scalar_lea.vmem %s14_s26, 16  ;;  %p1117_p1 = scmp.lt.s32.totalorder %s14_s26, %s14_s26 }
   0x3   :  { %p1113_p0 = scmp.ne.s32.totalorder %s14_s26, %s1112_s27  ;;  %p1118_p2 = scmp.lt.s32.totalorder %s1112_s27, %s1112_s27 }
   0x5   :  { %p1119_p3 = por %p1118_p2, %p1117_p1 }
   0x7   :  { %p1120_p4 = pnand %p1119_p3, %p1113_p0 }
   0x9   :  { %1123 = shalt.err (!%p1120_p4)  }
   0xa   :  { %s1290_s28 = smov [#allocation4]  }
   0xb   :  { %16 = dma.vmem_to_smem %s14_s26, 16, %s1290_s28, [#allocation3] }
   0xc   :  { %1278 = dma.done.wait [#allocation3], 16 }
   0xd   :  { %1279 = vsyncadd [#allocation3], 4294967280 }
   0xe   :  { %18 = sfence }
   0xf   :  { %19 = vsyncpa [#allocation6], 0 }
  0x10   :  { %20 = vsyncpa [#allocation9], 0 }
  0x11   :  { %21 = vsyncpa [#allocation12], 0 }
  0x12   :  { %22 = vsyncpa [#allocation7], 0 }
  0x13   :  { %23 = vsyncpa [#allocation16], 0  ;;  %s1291_s29 = smov [#allocation8]   ;;  %s1124_s9 = scalar_lea.hbm %s1518_s2, 8192 }
  0x14   :  { %s41_s0 = sshll.u32 %s1291_s29, 4  ;;  %p1125_p5 = scmp.ne.s32.totalorder %s1518_s2, %s1124_s9  ;;  %s42_s0 = int_to_ptr.vmem [resolvable:$true] %s41_s0 }
  0x15   :  { %p1128_p6 = scmp.lt.u32.totalorder %s1124_s9, %s1518_s2 }
  0x17   :  { %p1130_p7 = pnand %p1128_p6, %p1125_p5 }
  0x19   :  { %1133 = shalt.err (!%p1130_p7)
}
  0x1a   :  { %s1134_s14 = scalar_lea.vmem %s42_s0, 8192  ;;  %p1139_p9 = scmp.lt.s32.totalorder %s42_s0, %s42_s0 }
  0x1b   :  { %p1135_p8 = scmp.ne.s32.totalorder %s42_s0, %s1134_s14  ;;  %p1140_p10 = scmp.lt.s32.totalorder %s1134_s14, %s1134_s14 }
  0x1d   :  { %p1141_p11 = por %p1140_p10, %p1139_p9 }
  0x1f   :  { %p1142_p12 = pnand %p1141_p11, %p1135_p8 }
  0x21   :  { %1145 = shalt.err (!%p1142_p12)
}
  0x22   :  { %s1292_s15 = smov 512   ;;  %s1293_s16 = smov 32  }
  0x23   :  { %47 = dma.hbm_to_vmem [thread:$0]  %s1518_s2, 8192, %s42_s0, [#allocation9], %s1292_s15, %s1292_s15, %s1293_s16  }
  0x24   :  { %s1294_s19 = smov [#allocation11]   ;;  %s1146_s23 = scalar_lea.hbm %s1520_s4, 16384 }
  0x25   :  { %s63_s20 = sshll.u32 %s1294_s19, 4  ;;  %p1147_p13 = scmp.ne.s32.totalorder %s1520_s4, %s1146_s23  ;;  %s64_s20 = int_to_ptr.vmem [resolvable:$true] %s63_s20 }
  0x26   :  { %p1150_p0 = scmp.lt.u32.totalorder %s1146_s23, %s1520_s4 }
  0x28   :  { %p1152_p1 = pnand %p1150_p0, %p1147_p13 }
  0x2a   :  { %1155 = shalt.err (!%p1152_p1)
}
  0x2b   :  { %s1156_s28 = scalar_lea.vmem %s64_s20, 16384  ;;  %p1161_p3 = scmp.lt.s32.totalorder %s64_s20, %s64_s20 }
  0x2c   :  { %p1157_p2 = scmp.ne.s32.totalorder %s64_s20, %s1156_s28  ;;  %p1162_p4 = scmp.lt.s32.totalorder %s1156_s28, %s1156_s28 }
  0x2e   :  { %p1163_p5 = por %p1162_p4, %p1161_p3 }
  0x30   :  { %p1164_p6 = pnand %p1163_p5, %p1157_p2 }
  0x32   :  { %1167 = shalt.err (!%p1164_p6)
}
  0x33   :  { %s1295_s2 = smov 256   ;;  %s1296_s29 = smov 16  }
  0x34   :  { %69 = dma.hbm_to_vmem [thread:$0]  %s1520_s4, 16384, %s64_s20, [#allocation12], %s1295_s2, %s1295_s2, %s1296_s29  }
  0x35   :  { %s1297_s8 = smov [#allocation5]   ;;  %s1168_s12 = scalar_lea.hbm %s1517_s1, 512 }
  0x36   :  { %s29_s9 = sshll.u32 %s1297_s8, 4  ;;  %p1169_p7 = scmp.ne.s32.totalorder %s1517_s1, %s1168_s12  ;;  %s30_s9 = int_to_ptr.vmem [resolvable:$true] %s29_s9 }
  0x37   :  { %p1172_p8 = scmp.lt.u32.totalorder %s1168_s12, %s1517_s1 }
  0x39   :  { %p1174_p9 = pnand %p1172_p8, %p1169_p7 }
  0x3b   :  { %1177 = shalt.err (!%p1174_p9)
}
  0x3c   :  { %s1178_s17 = scalar_lea.vmem %s30_s9, 512  ;;  %p1183_p11 = scmp.lt.s32.totalorder %s30_s9, %s30_s9 }
  0x3d   :  { %p1179_p10 = scmp.ne.s32.totalorder %s30_s9, %s1178_s17  ;;  %p1184_p12 = scmp.lt.s32.totalorder %s1178_s17, %s1178_s17 }
  0x3f   :  { %p1185_p13 = por %p1184_p12, %p1183_p11 }
  0x41   :  { %p1186_p0 = pnand %p1185_p13, %p1179_p10 }
  0x43   :  { %1189 = shalt.err (!%p1186_p0)
}
  0x44   :  { %s1298_s4 = smov 128   ;;  %s1299_s18 = smov 8  }
  0x45   :  { %35 = dma.hbm_to_vmem [thread:$0]  %s1517_s1, 512, %s30_s9, [#allocation6], %s1298_s4, %s1298_s4, %s1299_s18  }
  0x46   :  { %s1300_s21 = smov [#allocation10]   ;;  %s1301_s23 = smov [#allocation13]  }
  0x47   :  { %s54_s22 = sshll.u32 %s1300_s21, 4  ;;  %s76_s24 = sshll.u32 %s1301_s23, 4  ;;  %s55_s22 = int_to_ptr.vmem [resolvable:$true] %s54_s22  ;;  %s77_s24 = int_to_ptr.vmem [resolvable:$true] %s76_s24 }
  0x48   :  { %s1190_s27 = scalar_lea.hbm %s1519_s3, 256 }
  0x49   :  { %p1191_p1 = scmp.ne.s32.totalorder %s1519_s3, %s1190_s27  ;;  %p1194_p2 = scmp.lt.u32.totalorder %s1190_s27, %s1519_s3 }
  0x4b   :  { %p1196_p3 = pnand %p1194_p2, %p1191_p1 }
  0x4d   :  { %1199 = shalt.err (!%p1196_p3)
}
  0x4e   :  { %s1200_s1 = scalar_lea.vmem %s55_s22, 256  ;;  %p1205_p5 = scmp.lt.s32.totalorder %s55_s22, %s55_s22 }
  0x4f   :  { %p1201_p4 = scmp.ne.s32.totalorder %s55_s22, %s1200_s1  ;;  %p1206_p6 = scmp.lt.s32.totalorder %s1200_s1, %s1200_s1 }
  0x51   :  { %p1207_p7 = por %p1206_p6, %p1205_p5 }
  0x53   :  { %p1208_p8 = pnand %p1207_p7, %p1201_p4 }
  0x55   :  { %1211 = shalt.err (!%p1208_p8)
}
  0x56   :  { %57 = dma.hbm_to_vmem [thread:$0]  %s1519_s3, 256, %s55_s22, [#allocation9]  }
  0x57   :  { %s1212_s11 = scalar_lea.hbm %s1521_s5, 32 }
  0x58   :  { %p1213_p9 = scmp.ne.s32.totalorder %s1521_s5, %s1212_s11  ;;  %p1216_p10 = scmp.lt.u32.totalorder %s1212_s11, %s1521_s5 }
  0x5a   :  { %p1218_p11 = pnand %p1216_p10, %p1213_p9 }
  0x5c   :  { %1221 = shalt.err (!%p1218_p11)
}
  0x5d   :  { %s1222_s16 = scalar_lea.vmem %s77_s24, 32  ;;  %p1227_p13 = scmp.lt.s32.totalorder %s77_s24, %s77_s24 }
  0x5e   :  { %p1223_p12 = scmp.ne.s32.totalorder %s77_s24, %s1222_s16  ;;  %p1228_p0 = scmp.lt.s32.totalorder %s1222_s16, %s1222_s16 }
  0x60   :  { %p1229_p1 = por %p1228_p0, %p1227_p13 }
  0x62   :  { %p1230_p2 = pnand %p1229_p1, %p1223_p12 }
  0x64   :  { %1233 = shalt.err (!%p1230_p2)
}
  0x65   :  { %79 = dma.hbm_to_vmem [thread:$0]  %s1521_s5, 32, %s77_s24, [#allocation12]  }
  0x66   :  { %1280 = dma.done.wait [#allocation6], 512  }
  0x67   :  { %1281 = vsyncadd [#allocation6], 4294966784 }
  0x68   :  { %1282 = dma.done.wait [#allocation9], 8448  }
  0x69   :  { %1283 = vsyncadd [#allocation9], 4294958848 }
  0x6a   :  { %1284 = dma.done.wait [#allocation12], 16416  }
  0x6b   :  { %1285 = vsyncadd [#allocation12], 4294950880  ;;  %v1302_v0 = vmov 0.0   ;;  %v129_v1 = vld [vmem:[#allocation8 + $0x8] sm:$0xff]  ;;  %v131_v3 = vld [vmem:[#allocation8 + $0x18] sm:$0xff]  ;;  %s1408_s5 = sld [smem:[#allocation4]] }
  0x6c   :  { %296 = vmatprep.mubr.f32.mxu0 %v1302_v0  ;;  %367 = vmatprep.mubr.f32.mxu1 %v1302_v0  ;;  %v133_v2 = vld [vmem:[#allocation8 + $0x28] sm:$0xff]  ;;  %v135_v5 = vld [vmem:[#allocation8 + $0x38] sm:$0xff]  ;;  %v128_v6 = vld [vmem:[#allocation8] sm:$0xff]  ;;  %s1410_s4 = sld [smem:[#allocation4 + $0x1]]  ;;  %s1412_s18 = sld [smem:[#allocation4 + $0x2]] }
  0x6d   :  { %v895_v4 = vpack.c.bf16 %v133_v2, %v129_v1  ;;  %v132_v7 = vld [vmem:[#allocation8 + $0x20] sm:$0xff]  ;;  %v927_v8 = vpack.c.bf16 %v135_v5, %v131_v3  ;;  %v130_v10 = vld [vmem:[#allocation8 + $0x10] sm:$0xff]  ;;  %v137_v12 = vld [vmem:[#allocation8 + $0x48] sm:$0xff]  ;;  %s1414_s19 = sld [smem:[#allocation4 + $0x3]]  ;;  %s1416_s20 = sld [smem:[#allocation4 + $0x4]] }
  0x6e   :  { %v897_v9 = vpack.c.bf16 %v132_v7, %v128_v6  ;;  %v134_v11 = vld [vmem:[#allocation8 + $0x30] sm:$0xff]  ;;  %v141_v14 = vld [vmem:[#allocation8 + $0x68] sm:$0xff]  ;;  %v139_v15 = vld [vmem:[#allocation8 + $0x58] sm:$0xff]  ;;  %s1418_s21 = sld [smem:[#allocation4 + $0x5]]  ;;  %s1420_s22 = sld [smem:[#allocation4 + $0x6]] }
  0x6f   :  { %896 = vmatprep.subr.bf16.mxu0 %v895_v4  ;;  %v929_v13 = vpack.c.bf16 %v134_v11, %v130_v10  ;;  %v143_v16 = vld [vmem:[#allocation8 + $0x78] sm:$0xff]  ;;  %928 = vmatprep.subr.bf16.mxu1 %v927_v8  ;;  %v899_v17 = vpack.c.bf16 %v141_v14, %v137_v12  ;;  %v136_v19 = vld [vmem:[#allocation8 + $0x40] sm:$0xff]  ;;  %v138_v21 = vld [vmem:[#allocation8 + $0x50] sm:$0xff]  ;;  %s1422_s23 = sld [smem:[#allocation4 + $0x7]]  ;;  %s1303_s1 = smov [#allocation14]  }
  0x70   :  { %898 = vmatpush1.bf16.msra.mxu0 %v897_v9  ;;  %v931_v18 = vpack.c.bf16 %v143_v16, %v139_v15  ;;  %v140_v20 = vld [vmem:[#allocation8 + $0x60] sm:$0xff]  ;;  %v142_v23 = vld [vmem:[#allocation8 + $0x70] sm:$0xff]  ;;  %v145_v24 = vld [vmem:[#allocation8 + $0x88] sm:$0xff]  ;;  %s853_s30 = sshll.u32 %s1303_s1, 4  ;;  %s1304_s8 = smov [#allocation15]   ;;  %s854_s30 = int_to_ptr.vmem [resolvable:$true] %s853_s30 }
  0x71   :  { %930 = vmatpush1.bf16.msra.mxu1 %v929_v13  ;;  %v901_v22 = vpack.c.bf16 %v140_v20, %v136_v19  ;;  %v149_v25 = vld [vmem:[#allocation8 + $0xa8] sm:$0xff]  ;;  %900 = vmatprep.subr.bf16.mxu0 %v899_v17  ;;  %v933_v26 = vpack.c.bf16 %v142_v23, %v138_v21  ;;  %v147_v28 = vld [vmem:[#allocation8 + $0x98] sm:$0xff]  ;;  %v144_v30 = vld [vmem:[#allocation8 + $0x80] sm:$0xff]  ;;  %s96_s24 = scalar_lea.vmem [#allocation5], %s1408_s5  ;;  %s863_s9 = sshll.u32 %s1304_s8, 4  ;;  %s864_s9 = int_to_ptr.vmem [resolvable:$true] %s863_s9 }
  0x72   :  { %932 = vmatprep.subr.bf16.mxu1 %v931_v18  ;;  %v903_v27 = vpack.c.bf16 %v149_v25, %v145_v24  ;;  %v151_v29 = vld [vmem:[#allocation8 + $0xb8] sm:$0xff]  ;;  %v148_v32 = vld [vmem:[#allocation8 + $0xa0] sm:$0xff]  ;;  %v146_v33 = vld [vmem:[#allocation8 + $0x90] sm:$0xff]  ;;  %s100_s25 = scalar_lea.vmem [#allocation5], %s1410_s4  ;;  %s104_s26 = scalar_lea.vmem [#allocation5], %s1412_s18 }
  0x73   :  { %v935_v31 = vpack.c.bf16 %v151_v29, %v147_v28  ;;  %v150_v34 = vld [vmem:[#allocation8 + $0xb0] sm:$0xff]  ;;  %v905_v35 = vpack.c.bf16 %v148_v32, %v144_v30  ;;  %v153_v36 = vld [vmem:[#allocation8 + $0xc8] sm:$0xff]  ;;  %v155_v38 = vld [vmem:[#allocation8 + $0xd8] sm:$0xff]  ;;  %s108_s27 = scalar_lea.vmem [#allocation5], %s1414_s19  ;;  %s112_s28 = scalar_lea.vmem [#allocation5], %s1416_s20 }
  0x74   :  { %902 = vmatpush1.bf16.msra.mxu0 %v901_v22  ;;  %v157_v37 = vld [vmem:[#allocation8 + $0xe8] sm:$0xff]  ;;  %v937_v39 = vpack.c.bf16 %v150_v34, %v146_v33  ;;  %v159_v41 = vld [vmem:[#allocation8 + $0xf8] sm:$0xff]  ;;  %v152_v42 = vld [vmem:[#allocation8 + $0xc0] sm:$0xff]  ;;  %s116_s2 = scalar_lea.vmem [#allocation5], %s1418_s21  ;;  %s120_s29 = scalar_lea.vmem [#allocation5], %s1420_s22 }
  0x75   :  { %934 = vmatpush1.bf16.msra.mxu1 %v933_v26  ;;  %904 = vmatprep.subr.bf16.mxu0 %v903_v27  ;;  %v907_v40 = vpack.c.bf16 %v157_v37, %v153_v36  ;;  %v156_v43 = vld [vmem:[#allocation8 + $0xe0] sm:$0xff]  ;;  %v939_v44 = vpack.c.bf16 %v159_v41, %v155_v38  ;;  %v154_v45 = vld [vmem:[#allocation8 + $0xd0] sm:$0xff]  ;;  %v161_v47 = vld [vmem:[#allocation8 + $0x108] sm:$0xff]  ;;  %s124_s0 = scalar_lea.vmem [#allocation5], %s1422_s23  ;;  %s1234_s10 = scalar_lea.vmem %s854_s30, 128 }
  0x76   :  { %936 = vmatprep.subr.bf16.mxu1 %v935_v31  ;;  %v158_v46 = vld [vmem:[#allocation8 + $0xf0] sm:$0xff]  ;;  %v165_v48 = vld [vmem:[#allocation8 + $0x128] sm:$0xff]  ;;  %v163_v49 = vld [vmem:[#allocation8 + $0x118] sm:$0xff]  ;;  %v909_v51 = vpack.c.bf16 %v156_v43, %v152_v42  ;;  %p1235_p3 = scmp.ne.s32.totalorder %s854_s30, %s1234_s10  ;;  %p1239_p4 = scmp.lt.s32.totalorder %s854_s30, %s854_s30 }
  0x77   :  { %v167_v50 = vld [vmem:[#allocation8 + $0x138] sm:$0xff]  ;;  %v941_v52 = vpack.c.bf16 %v158_v46, %v154_v45  ;;  %v911_v53 = vpack.c.bf16 %v165_v48, %v161_v47  ;;  %v160_v54 = vld [vmem:[#allocation8 + $0x100] sm:$0xff]  ;;  %v162_v56 = vld [vmem:[#allocation8 + $0x110] sm:$0xff]  ;;  %p1240_p5 = scmp.lt.s32.totalorder %s1234_s10, %s1234_s10 }
  0x78   :  { %906 = vmatpush1.bf16.msra.mxu0 %v905_v35  ;;  %v164_v55 = vld [vmem:[#allocation8 + $0x120] sm:$0xff]  ;;  %v943_v57 = vpack.c.bf16 %v167_v50, %v163_v49  ;;  %v166_v58 = vld [vmem:[#allocation8 + $0x130] sm:$0xff]  ;;  %v169_v59 = vld [vmem:[#allocation8 + $0x148] sm:$0xff] }
  0x79   :  { %938 = vmatpush1.bf16.msra.mxu1 %v937_v39  ;;  %908 = vmatprep.subr.bf16.mxu0 %v907_v40  ;;  %v173_v60 = vld [vmem:[#allocation8 + $0x168] sm:$0xff]  ;;  %v171_v61 = vld [vmem:[#allocation8 + $0x158] sm:$0xff]  ;;  %v913_v63 = vpack.c.bf16 %v164_v55, %v160_v54  ;;  %v168_v0 = vld [vmem:[#allocation8 + $0x140] sm:$0xff]  ;;  %v945_v1 = vpack.c.bf16 %v166_v58, %v162_v56  ;;  %p1241_p6 = por %p1240_p5, %p1239_p4 }
  0x7a   :  { %940 = vmatprep.subr.bf16.mxu1 %v939_v44  ;;  %v175_v62 = vld [vmem:[#allocation8 + $0x178] sm:$0xff]  ;;  %v915_v2 = vpack.c.bf16 %v173_v60, %v169_v59  ;;  %v172_v3 = vld [vmem:[#allocation8 + $0x160] sm:$0xff]  ;;  %v170_v4 = vld [vmem:[#allocation8 + $0x150] sm:$0xff] }
  0x7b   :  { %v174_v5 = vld [vmem:[#allocation8 + $0x170] sm:$0xff]  ;;  %v947_v6 = vpack.c.bf16 %v175_v62, %v171_v61  ;;  %v177_v7 = vld [vmem:[#allocation8 + $0x188] sm:$0xff]  ;;  %v179_v9 = vld [vmem:[#allocation8 + $0x198] sm:$0xff]  ;;  %v917_v13 = vpack.c.bf16 %v172_v3, %v168_v0  ;;  %p1242_p7 = pnand %p1241_p6, %p1235_p3 }
  0x7c   :  { %910 = vmatpush1.bf16.msra.mxu0 %v909_v51  ;;  %v181_v8 = vld [vmem:[#allocation8 + $0x1a8] sm:$0xff]  ;;  %v183_v10 = vld [vmem:[#allocation8 + $0x1b8] sm:$0xff]  ;;  %v176_v11 = vld [vmem:[#allocation8 + $0x180] sm:$0xff]  ;;  %v949_v18 = vpack.c.bf16 %v174_v5, %v170_v4 }
  0x7d   :  { %942 = vmatpush1.bf16.msra.mxu1 %v941_v52  ;;  %912 = vmatprep.subr.bf16.mxu0 %v911_v53  ;;  %v180_v12 = vld [vmem:[#allocation8 + $0x1a0] sm:$0xff]  ;;  %v178_v14 = vld [vmem:[#allocation8 + $0x190] sm:$0xff]  ;;  %v185_v16 = vld [vmem:[#allocation8 + $0x1c8] sm:$0xff]  ;;  %v919_v19 = vpack.c.bf16 %v181_v8, %v177_v7  ;;  %v951_v24 = vpack.c.bf16 %v183_v10, %v179_v9 }
  0x7e   :  { %944 = vmatprep.subr.bf16.mxu1 %v943_v57  ;;  %v182_v15 = vld [vmem:[#allocation8 + $0x1b0] sm:$0xff]  ;;  %v189_v17 = vld [vmem:[#allocation8 + $0x1e8] sm:$0xff]  ;;  %v187_v20 = vld [vmem:[#allocation8 + $0x1d8] sm:$0xff]  ;;  %v921_v31 = vpack.c.bf16 %v180_v12, %v176_v11 }
  0x7f   :  { %v191_v21 = vld [vmem:[#allocation8 + $0x1f8] sm:$0xff]  ;;  %v953_v32 = vpack.c.bf16 %v182_v15, %v178_v14  ;;  %v923_v33 = vpack.c.bf16 %v189_v17, %v185_v16  ;;  %v184_v34 = vld [vmem:[#allocation8 + $0x1c0] sm:$0xff]  ;;  %v186_v37 = vld [vmem:[#allocation8 + $0x1d0] sm:$0xff] }
  0x80   :  { %914 = vmatpush1.bf16.msra.mxu0 %v913_v63  ;;  %v97_v22 = vld [vmem:[%s96_s24] sm:$0x1]  ;;  %v188_v35 = vld [vmem:[#allocation8 + $0x1e0] sm:$0xff]  ;;  %v955_v36 = vpack.c.bf16 %v191_v21, %v187_v20  ;;  %v190_v38 = vld [vmem:[#allocation8 + $0x1f0] sm:$0xff] }
  0x81   :  { %946 = vmatpush1.bf16.msra.mxu1 %v945_v1  ;;  %916 = vmatprep.subr.bf16.mxu0 %v915_v2  ;;  %v101_v23 = vld [vmem:[%s100_s25] sm:$0x1]  ;;  %98 = vst [vmem:[#allocation2] sm:$0x1] %v97_v22  ;;  %v925_v39 = vpack.c.bf16 %v188_v35, %v184_v34  ;;  %v957_v40 = vpack.c.bf16 %v190_v38, %v186_v37  ;;  %v566_v43 = vld [vmem:[#allocation11 + $0x18] sm:$0xff]  ;;  %v563_v47 = vld [vmem:[#allocation11] sm:$0xff] }
  0x82   :  { %948 = vmatprep.subr.bf16.mxu1 %v947_v6  ;;  %102 = vst [vmem:[#allocation2 + $0x1] sm:$0x1] %v101_v23  ;;  %v105_v25 = vld [vmem:[%s104_s26] sm:$0x1]  ;;  %v630_v46 = vld [vmem:[#allocation11 + $0x218] sm:$0xff]  ;;  %v565_v48 = vld [vmem:[#allocation11 + $0x10] sm:$0xff] }
  0x83   :  { %v109_v26 = vld [vmem:[%s108_s27] sm:$0x1]  ;;  %106 = vst [vmem:[#allocation2 + $0x2] sm:$0x1] %v105_v25  ;;  %v961_v50 = vpack.c.bf16 %v565_v48, %v563_v47  ;;  %v627_v51 = vld [vmem:[#allocation11 + $0x200] sm:$0xff]  ;;  %v629_v52 = vld [vmem:[#allocation11 + $0x210] sm:$0xff] }
  0x84   :  { %v113_v27 = vld [vmem:[%s112_s28] sm:$0x1]  ;;  %110 = vst [vmem:[#allocation2 + $0x3] sm:$0x1] %v109_v26  ;;  %918 = vmatpush1.bf16.msra.mxu0 %v917_v13  ;;  %v1025_v53 = vpack.c.bf16 %v629_v52, %v627_v51  ;;  %v570_v55 = vld [vmem:[#allocation11 + $0x38] sm:$0xff]  ;;  %v567_v59 = vld [vmem:[#allocation11 + $0x20] sm:$0xff] }
  0x85   :  { %114 = vst [vmem:[#allocation2 + $0x4] sm:$0x1] %v113_v27  ;;  %v117_v28 = vld [vmem:[%s116_s2] sm:$0x1]  ;;  %950 = vmatpush1.bf16.msra.mxu1 %v949_v18  ;;  %920 = vmatprep.subr.bf16.mxu0 %v919_v19  ;;  %v634_v58 = vld [vmem:[#allocation11 + $0x238] sm:$0xff]  ;;  %v569_v60 = vld [vmem:[#allocation11 + $0x30] sm:$0xff] }
  0x86   :  { %v121_v29 = vld [vmem:[%s120_s29] sm:$0x1]  ;;  %118 = vst [vmem:[#allocation2 + $0x5] sm:$0x1] %v117_v28  ;;  %952 = vmatprep.subr.bf16.mxu1 %v951_v24  ;;  %v965_v62 = vpack.c.bf16 %v569_v60, %v567_v59  ;;  %v631_v63 = vld [vmem:[#allocation11 + $0x220] sm:$0xff]  ;;  %v633_v0 = vld [vmem:[#allocation11 + $0x230] sm:$0xff] }
  0x87   :  { %v125_v30 = vld [vmem:[%s124_s0] sm:$0x1]  ;;  %122 = vst [vmem:[#allocation2 + $0x6] sm:$0x1] %v121_v29  ;;  %v1029_v1 = vpack.c.bf16 %v633_v0, %v631_v63  ;;  %v574_v3 = vld [vmem:[#allocation11 + $0x58] sm:$0xff]  ;;  %v571_v7 = vld [vmem:[#allocation11 + $0x40] sm:$0xff] }
  0x88   :  { %126 = vst [vmem:[#allocation2 + $0x7] sm:$0x1] %v125_v30  ;;  %922 = vmatpush1.bf16.msra.mxu0 %v921_v31  ;;  %v564_v42 = vld [vmem:[#allocation11 + $0x8] sm:$0xff]  ;;  %v638_v6 = vld [vmem:[#allocation11 + $0x258] sm:$0xff]  ;;  %v573_v8 = vld [vmem:[#allocation11 + $0x50] sm:$0xff] }
  0x89   :  { %954 = vmatpush1.bf16.msra.mxu1 %v953_v32  ;;  %924 = vmatprep.subr.bf16.mxu0 %v923_v33  ;;  %v628_v44 = vld [vmem:[#allocation11 + $0x208] sm:$0xff]  ;;  %v959_v45 = vpack.c.bf16 %v566_v43, %v564_v42  ;;  %v969_v10 = vpack.c.bf16 %v573_v8, %v571_v7  ;;  %v635_v11 = vld [vmem:[#allocation11 + $0x240] sm:$0xff]  ;;  %v637_v12 = vld [vmem:[#allocation11 + $0x250] sm:$0xff] }
  0x8a   :  { %956 = vmatprep.subr.bf16.mxu1 %v955_v36  ;;  %v1023_v49 = vpack.c.bf16 %v630_v46, %v628_v44  ;;  %v568_v54 = vld [vmem:[#allocation11 + $0x28] sm:$0xff]  ;;  %v1033_v13 = vpack.c.bf16 %v637_v12, %v635_v11  ;;  %v578_v15 = vld [vmem:[#allocation11 + $0x78] sm:$0xff]  ;;  %v575_v19 = vld [vmem:[#allocation11 + $0x60] sm:$0xff] }
  0x8b   :  { %v632_v56 = vld [vmem:[#allocation11 + $0x228] sm:$0xff]  ;;  %v963_v57 = vpack.c.bf16 %v570_v55, %v568_v54  ;;  %v642_v18 = vld [vmem:[#allocation11 + $0x278] sm:$0xff]  ;;  %v577_v20 = vld [vmem:[#allocation11 + $0x70] sm:$0xff] }
  0x8c   :  { %926 = vmatpush1.bf16.msra.mxu0 %v925_v39  ;;  %v1027_v61 = vpack.c.bf16 %v634_v58, %v632_v56  ;;  %v572_v2 = vld [vmem:[#allocation11 + $0x48] sm:$0xff]  ;;  %v973_v22 = vpack.c.bf16 %v577_v20, %v575_v19  ;;  %v639_v23 = vld [vmem:[#allocation11 + $0x260] sm:$0xff]  ;;  %v641_v24 = vld [vmem:[#allocation11 + $0x270] sm:$0xff] }
  0x8d   :  { %958 = vmatpush1.bf16.msra.mxu1 %v957_v40  ;;  %1024 = vmatprep.subr.bf16.mxu0 %v1023_v49  ;;  %v636_v4 = vld [vmem:[#allocation11 + $0x248] sm:$0xff]  ;;  %v967_v5 = vpack.c.bf16 %v574_v3, %v572_v2  ;;  %v1037_v25 = vpack.c.bf16 %v641_v24, %v639_v23  ;;  %v582_v27 = vld [vmem:[#allocation11 + $0x98] sm:$0xff]  ;;  %v579_v31 = vld [vmem:[#allocation11 + $0x80] sm:$0xff] }
  0x8e   :  { %960 = vmatprep.subr.bf16.mxu1 %v959_v45  ;;  %v1031_v9 = vpack.c.bf16 %v638_v6, %v636_v4  ;;  %v576_v14 = vld [vmem:[#allocation11 + $0x68] sm:$0xff]  ;;  %v646_v30 = vld [vmem:[#allocation11 + $0x298] sm:$0xff]  ;;  %v581_v32 = vld [vmem:[#allocation11 + $0x90] sm:$0xff] }
  0x8f   :  { %v127_v41 = vld [vmem:[#allocation2] sm:$0xff]  ;;  %v971_v17 = vpack.c.bf16 %v578_v15, %v576_v14  ;;  %v977_v34 = vpack.c.bf16 %v581_v32, %v579_v31  ;;  %v643_v35 = vld [vmem:[#allocation11 + $0x280] sm:$0xff]  ;;  %v645_v36 = vld [vmem:[#allocation11 + $0x290] sm:$0xff] }
  0x90   :  { %297 = vmatmul.mubr.f32.vlgmr.msra.gmra.mrb[0].mxu0 %v127_v41  ;;  %368 = vmatmul.mubr.f32.vlgmr.msra.gmra.mrb[0].mxu1 %v127_v41  ;;  %v640_v16 = vld [vmem:[#allocation11 + $0x268] sm:$0xff]  ;;  %v1041_v37 = vpack.c.bf16 %v645_v36, %v643_v35  ;;  %v586_v39 = vld [vmem:[#allocation11 + $0xb8] sm:$0xff]  ;;  %v583_v43 = vld [vmem:[#allocation11 + $0xa0] sm:$0xff] }
  0x91   :  { %962 = vmatpush1.bf16.msra.mxu1 %v961_v50  ;;  %1026 = vmatpush1.bf16.msra.mxu0 %v1025_v53  ;;  %v1035_v21 = vpack.c.bf16 %v642_v18, %v640_v16  ;;  %v580_v26 = vld [vmem:[#allocation11 + $0x88] sm:$0xff]  ;;  %v650_v42 = vld [vmem:[#allocation11 + $0x2b8] sm:$0xff]  ;;  %v585_v44 = vld [vmem:[#allocation11 + $0xb0] sm:$0xff] }
  0x92   :  { %964 = vmatprep.subr.bf16.mxu1 %v963_v57  ;;  %1028 = vmatprep.subr.bf16.mxu0 %v1027_v61  ;;  %v644_v28 = vld [vmem:[#allocation11 + $0x288] sm:$0xff]  ;;  %v975_v29 = vpack.c.bf16 %v582_v27, %v580_v26  ;;  %v981_v46 = vpack.c.bf16 %v585_v44, %v583_v43  ;;  %v647_v47 = vld [vmem:[#allocation11 + $0x2a0] sm:$0xff]  ;;  %v649_v48 = vld [vmem:[#allocation11 + $0x2b0] sm:$0xff] }
  0x93   :  { %v1039_v33 = vpack.c.bf16 %v646_v30, %v644_v28  ;;  %v584_v38 = vld [vmem:[#allocation11 + $0xa8] sm:$0xff]  ;;  %v1045_v49 = vpack.c.bf16 %v649_v48, %v647_v47  ;;  %v590_v51 = vld [vmem:[#allocation11 + $0xd8] sm:$0xff]  ;;  %v587_v55 = vld [vmem:[#allocation11 + $0xc0] sm:$0xff] }
  0x94   :  { %v648_v40 = vld [vmem:[#allocation11 + $0x2a8] sm:$0xff]  ;;  %v979_v41 = vpack.c.bf16 %v586_v39, %v584_v38  ;;  %v654_v54 = vld [vmem:[#allocation11 + $0x2d8] sm:$0xff]  ;;  %v589_v56 = vld [vmem:[#allocation11 + $0xd0] sm:$0xff] }
  0x95   :  { %966 = vmatpush1.bf16.msra.mxu1 %v965_v62  ;;  %1030 = vmatpush1.bf16.msra.mxu0 %v1029_v1  ;;  %v1043_v45 = vpack.c.bf16 %v650_v42, %v648_v40  ;;  %v588_v50 = vld [vmem:[#allocation11 + $0xc8] sm:$0xff]  ;;  %v985_v58 = vpack.c.bf16 %v589_v56, %v587_v55  ;;  %v651_v59 = vld [vmem:[#allocation11 + $0x2c0] sm:$0xff]  ;;  %v653_v60 = vld [vmem:[#allocation11 + $0x2d0] sm:$0xff] }
  0x96   :  { %968 = vmatprep.subr.bf16.mxu1 %v967_v5  ;;  %1032 = vmatprep.subr.bf16.mxu0 %v1031_v9  ;;  %v652_v52 = vld [vmem:[#allocation11 + $0x2c8] sm:$0xff]  ;;  %v983_v53 = vpack.c.bf16 %v590_v51, %v588_v50  ;;  %v1049_v61 = vpack.c.bf16 %v653_v60, %v651_v59  ;;  %v594_v63 = vld [vmem:[#allocation11 + $0xf8] sm:$0xff]  ;;  %v591_v3 = vld [vmem:[#allocation11 + $0xe0] sm:$0xff] }
  0x97   :  { %v1047_v57 = vpack.c.bf16 %v654_v54, %v652_v52  ;;  %v592_v62 = vld [vmem:[#allocation11 + $0xe8] sm:$0xff]  ;;  %v658_v2 = vld [vmem:[#allocation11 + $0x2f8] sm:$0xff]  ;;  %v593_v4 = vld [vmem:[#allocation11 + $0xf0] sm:$0xff] }
  0x98   :  { %v656_v0 = vld [vmem:[#allocation11 + $0x2e8] sm:$0xff]  ;;  %v987_v1 = vpack.c.bf16 %v594_v63, %v592_v62  ;;  %v989_v6 = vpack.c.bf16 %v593_v4, %v591_v3  ;;  %v655_v7 = vld [vmem:[#allocation11 + $0x2e0] sm:$0xff]  ;;  %v657_v8 = vld [vmem:[#allocation11 + $0x2f0] sm:$0xff] }
  0x99   :  { %970 = vmatpush1.bf16.msra.mxu1 %v969_v10  ;;  %1034 = vmatpush1.bf16.msra.mxu0 %v1033_v13  ;;  %v1051_v5 = vpack.c.bf16 %v658_v2, %v656_v0  ;;  %v1053_v9 = vpack.c.bf16 %v657_v8, %v655_v7  ;;  %v596_v10 = vld [vmem:[#allocation11 + $0x108] sm:$0xff]  ;;  %v598_v11 = vld [vmem:[#allocation11 + $0x118] sm:$0xff]  ;;  %v595_v15 = vld [vmem:[#allocation11 + $0x100] sm:$0xff] }
  0x9a   :  { %972 = vmatprep.subr.bf16.mxu1 %v971_v17  ;;  %1036 = vmatprep.subr.bf16.mxu0 %v1035_v21  ;;  %v660_v12 = vld [vmem:[#allocation11 + $0x308] sm:$0xff]  ;;  %v991_v13 = vpack.c.bf16 %v598_v11, %v596_v10  ;;  %v662_v14 = vld [vmem:[#allocation11 + $0x318] sm:$0xff]  ;;  %v597_v16 = vld [vmem:[#allocation11 + $0x110] sm:$0xff] }
  0x9b   :  { %v1055_v17 = vpack.c.bf16 %v662_v14, %v660_v12  ;;  %v993_v18 = vpack.c.bf16 %v597_v16, %v595_v15  ;;  %v659_v19 = vld [vmem:[#allocation11 + $0x300] sm:$0xff]  ;;  %v661_v20 = vld [vmem:[#allocation11 + $0x310] sm:$0xff]  ;;  %v600_v21 = vld [vmem:[#allocation11 + $0x128] sm:$0xff] }
  0x9c   :  { %v602_v23 = vld [vmem:[#allocation11 + $0x138] sm:$0xff]  ;;  %v664_v24 = vld [vmem:[#allocation11 + $0x328] sm:$0xff]  ;;  %v599_v28 = vld [vmem:[#allocation11 + $0x120] sm:$0xff] }
  0x9d   :  { %974 = vmatpush1.bf16.msra.mxu1 %v973_v22  ;;  %1038 = vmatpush1.bf16.msra.mxu0 %v1037_v25  ;;  %v1057_v22 = vpack.c.bf16 %v661_v20, %v659_v19  ;;  %v666_v25 = vld [vmem:[#allocation11 + $0x338] sm:$0xff]  ;;  %v995_v26 = vpack.c.bf16 %v602_v23, %v600_v21  ;;  %v663_v30 = vld [vmem:[#allocation11 + $0x320] sm:$0xff]  ;;  %v665_v32 = vld [vmem:[#allocation11 + $0x330] sm:$0xff] }
  0x9e   :  { %976 = vmatprep.subr.bf16.mxu1 %v975_v29  ;;  %1040 = vmatprep.subr.bf16.mxu0 %v1039_v33  ;;  %v1059_v27 = vpack.c.bf16 %v666_v25, %v664_v24  ;;  %v601_v29 = vld [vmem:[#allocation11 + $0x130] sm:$0xff]  ;;  %v604_v33 = vld [vmem:[#allocation11 + $0x148] sm:$0xff]  ;;  %v1061_v35 = vpack.c.bf16 %v665_v32, %v663_v30  ;;  %v670_v38 = vld [vmem:[#allocation11 + $0x358] sm:$0xff] }
  0x9f   :  { %v997_v31 = vpack.c.bf16 %v601_v29, %v599_v28  ;;  %v603_v39 = vld [vmem:[#allocation11 + $0x140] sm:$0xff]  ;;  %v669_v43 = vld [vmem:[#allocation11 + $0x350] sm:$0xff]  ;;  %v608_v44 = vld [vmem:[#allocation11 + $0x168] sm:$0xff] }
  0xa0   :  { %v667_v42 = vld [vmem:[#allocation11 + $0x340] sm:$0xff]  ;;  %v674_v48 = vld [vmem:[#allocation11 + $0x378] sm:$0xff]  ;;  %v609_v52 = vld [vmem:[#allocation11 + $0x170] sm:$0xff] }
  0xa1   :  { %978 = vmatpush1.bf16.msra.mxu1 %v977_v34  ;;  %1042 = vmatpush1.bf16.msra.mxu0 %v1041_v37  ;;  %v606_v34 = vld [vmem:[#allocation11 + $0x158] sm:$0xff]  ;;  %v668_v37 = vld [vmem:[#allocation11 + $0x348] sm:$0xff]  ;;  %v607_v51 = vld [vmem:[#allocation11 + $0x160] sm:$0xff] }
  0xa2   :  { %980 = vmatprep.subr.bf16.mxu1 %v979_v41  ;;  %1044 = vmatprep.subr.bf16.mxu0 %v1043_v45  ;;  %v999_v36 = vpack.c.bf16 %v606_v34, %v604_v33  ;;  %v1063_v40 = vpack.c.bf16 %v670_v38, %v668_v37  ;;  %v605_v41 = vld [vmem:[#allocation11 + $0x150] sm:$0xff]  ;;  %v610_v45 = vld [vmem:[#allocation11 + $0x178] sm:$0xff]  ;;  %v612_v56 = vld [vmem:[#allocation11 + $0x188] sm:$0xff]  ;;  %v1005_v60 = vpack.c.bf16 %v609_v52, %v607_v51 }
  0xa3   :  { %v1001_v47 = vpack.c.bf16 %v605_v41, %v603_v39  ;;  %v1003_v50 = vpack.c.bf16 %v610_v45, %v608_v44  ;;  %v673_v55 = vld [vmem:[#allocation11 + $0x370] sm:$0xff]  ;;  %v678_v59 = vld [vmem:[#allocation11 + $0x398] sm:$0xff]  ;;  %v611_v63 = vld [vmem:[#allocation11 + $0x180] sm:$0xff] }
  0xa4   :  { %v613_v0 = vld [vmem:[#allocation11 + $0x190] sm:$0xff]  ;;  %v616_v4 = vld [vmem:[#allocation11 + $0x1a8] sm:$0xff]  ;;  %v682_v7 = vld [vmem:[#allocation11 + $0x3b8] sm:$0xff] }
  0xa5   :  { %982 = vmatpush1.bf16.msra.mxu1 %v981_v46  ;;  %1046 = vmatpush1.bf16.msra.mxu0 %v1045_v49  ;;  %v672_v46 = vld [vmem:[#allocation11 + $0x368] sm:$0xff]  ;;  %v1065_v49 = vpack.c.bf16 %v669_v43, %v667_v42  ;;  %v677_v3 = vld [vmem:[#allocation11 + $0x390] sm:$0xff]  ;;  %v1009_v8 = vpack.c.bf16 %v613_v0, %v611_v63  ;;  %v615_v11 = vld [vmem:[#allocation11 + $0x1a0] sm:$0xff]  ;;  %v196_v42 = vlaneseq }
  0xa6   :  { %984 = vmatprep.subr.bf16.mxu1 %v983_v53  ;;  %1048 = vmatprep.subr.bf16.mxu0 %v1047_v57  ;;  %v671_v53 = vld [vmem:[#allocation11 + $0x360] sm:$0xff]  ;;  %v1067_v54 = vpack.c.bf16 %v674_v48, %v672_v46  ;;  %v614_v57 = vld [vmem:[#allocation11 + $0x198] sm:$0xff]  ;;  %v617_v12 = vld [vmem:[#allocation11 + $0x1b0] sm:$0xff] }
  0xa7   :  { %v1007_v62 = vpack.c.bf16 %v614_v57, %v612_v56  ;;  %v681_v15 = vld [vmem:[#allocation11 + $0x3b0] sm:$0xff]  ;;  %v620_v16 = vld [vmem:[#allocation11 + $0x1c8] sm:$0xff]  ;;  %v686_v19 = vld [vmem:[#allocation11 + $0x3d8] sm:$0xff]  ;;  %v1013_v20 = vpack.c.bf16 %v617_v12, %v615_v11  ;;  %v1432_v43 = vshrl.u32 %v196_v42, 7 }
  0xa8   :  { %v619_v23 = vld [vmem:[#allocation11 + $0x1c0] sm:$0xff]  ;;  %v621_v24 = vld [vmem:[#allocation11 + $0x1d0] sm:$0xff]  ;;  %v624_v28 = vld [vmem:[#allocation11 + $0x1e8] sm:$0xff] }
  0xa9   :  { %986 = vmatpush1.bf16.msra.mxu1 %v985_v58  ;;  %1050 = vmatpush1.bf16.msra.mxu0 %v1049_v61  ;;  %v676_v58 = vld [vmem:[#allocation11 + $0x388] sm:$0xff]  ;;  %v1069_v61 = vpack.c.bf16 %v673_v55, %v671_v53  ;;  %v683_v25 = vld [vmem:[#allocation11 + $0x3c0] sm:$0xff]  ;;  %v626_v29 = vld [vmem:[#allocation11 + $0x1f8] sm:$0xff]  ;;  %v1017_v32 = vpack.c.bf16 %v621_v24, %v619_v23  ;;  %v198_v44 = vsub.s32 0, %v1432_v43  ;;  %v202_v46 = vsub.s32 4, %v1432_v43 }
  0xaa   :  { %988 = vmatprep.subr.bf16.mxu1 %v987_v1  ;;  %1052 = vmatprep.subr.bf16.mxu0 %v1051_v5  ;;  %v675_v1 = vld [vmem:[#allocation11 + $0x380] sm:$0xff]  ;;  %v1071_v2 = vpack.c.bf16 %v678_v59, %v676_v58  ;;  %v618_v5 = vld [vmem:[#allocation11 + $0x1b8] sm:$0xff]  ;;  %v688_v30 = vld [vmem:[#allocation11 + $0x3e8] sm:$0xff]  ;;  %v1019_v34 = vpack.c.bf16 %v626_v29, %v624_v28 }
  0xab   :  { %v1011_v10 = vpack.c.bf16 %v618_v5, %v616_v4  ;;  %v687_v38 = vld [vmem:[#allocation11 + $0x3e0] sm:$0xff]  ;;  %v689_v39 = vld [vmem:[#allocation11 + $0x3f0] sm:$0xff] }
  0xac   :  { %v1085_v41 = vpack.c.bf16 %v689_v39, %v687_v38  ;;  %v1435_v45 = vld [vmem:[#allocation10] sm:$0x77] }
  0xad   :  { %990 = vmatpush1.bf16.msra.mxu1 %v989_v6  ;;  %1054 = vmatpush1.bf16.msra.mxu0 %v1053_v9  ;;  %v680_v6 = vld [vmem:[#allocation11 + $0x3a8] sm:$0xff]  ;;  %v1073_v9 = vpack.c.bf16 %v677_v3, %v675_v1  ;;  %v199_v48 = vrot.slane %v1435_v45, %v198_v44 }
  0xae   :  { %992 = vmatprep.subr.bf16.mxu1 %v991_v13  ;;  %1056 = vmatprep.subr.bf16.mxu0 %v1055_v17  ;;  %v679_v13 = vld [vmem:[#allocation11 + $0x3a0] sm:$0xff]  ;;  %v1075_v14 = vpack.c.bf16 %v682_v7, %v680_v6  ;;  %v622_v17 = vld [vmem:[#allocation11 + $0x1d8] sm:$0xff] }
  0xaf   :  { %v1077_v21 = vpack.c.bf16 %v681_v15, %v679_v13  ;;  %v219_v52 = vrot.slane %v199_v48, %v198_v44 }
  0xb1   :  { %994 = vmatpush1.bf16.msra.mxu1 %v993_v18  ;;  %1058 = vmatpush1.bf16.msra.mxu0 %v1057_v22  ;;  %v684_v18 = vld [vmem:[#allocation11 + $0x3c8] sm:$0xff]  ;;  %v1015_v22 = vpack.c.bf16 %v622_v17, %v620_v16 }
  0xb2   :  { %996 = vmatprep.subr.bf16.mxu1 %v995_v26  ;;  %1060 = vmatprep.subr.bf16.mxu0 %v1059_v27  ;;  %v1079_v26 = vpack.c.bf16 %v686_v19, %v684_v18  ;;  %v685_v27 = vld [vmem:[#allocation11 + $0x3d0] sm:$0xff] }
  0xb3   :  { %v1081_v33 = vpack.c.bf16 %v685_v27, %v683_v25 }
  0xb5   :  { %998 = vmatpush1.bf16.msra.mxu1 %v997_v31  ;;  %1062 = vmatpush1.bf16.msra.mxu0 %v1061_v35  ;;  %v690_v31 = vld [vmem:[#allocation11 + $0x3f8] sm:$0xff]  ;;  %v623_v35 = vld [vmem:[#allocation11 + $0x1e0] sm:$0xff] }
  0xb6   :  { %1000 = vmatprep.subr.bf16.mxu1 %v999_v36  ;;  %1064 = vmatprep.subr.bf16.mxu0 %v1063_v40  ;;  %v625_v36 = vld [vmem:[#allocation11 + $0x1f0] sm:$0xff]  ;;  %v1083_v37 = vpack.c.bf16 %v690_v31, %v688_v30 }
  0xb7   :  { %v1021_v40 = vpack.c.bf16 %v625_v36, %v623_v35 }
  0xb9   :  { %1002 = vmatpush1.bf16.msra.mxu1 %v1001_v47  ;;  %1066 = vmatpush1.bf16.msra.mxu0 %v1065_v49  ;;  %v1438_v47 = vld [vmem:[#allocation10 + $0x8] sm:$0x77] }
  0xba   :  { %1004 = vmatprep.subr.bf16.mxu1 %v1003_v50  ;;  %1068 = vmatprep.subr.bf16.mxu0 %v1067_v54  ;;  %v207_v49 = vrot.slane %v1438_v47, %v198_v44  ;;  %v203_v50 = vrot.slane %v1435_v45, %v202_v46  ;;  %v211_v51 = vrot.slane %v1438_v47, %v202_v46 }
  0xbc   :  { %v227_v53 = vrot.slane %v207_v49, %v198_v44  ;;  %v223_v54 = vrot.slane %v203_v50, %v198_v44  ;;  %v231_v55 = vrot.slane %v211_v51, %v198_v44 }
  0xbd   :  { %1006 = vmatpush1.bf16.msra.mxu1 %v1005_v60  ;;  %1070 = vmatpush1.bf16.msra.mxu0 %v1069_v61 }
  0xbe   :  { %1008 = vmatprep.subr.bf16.mxu1 %v1007_v62  ;;  %1072 = vmatprep.subr.bf16.mxu0 %v1071_v2 }
  0xc1   :  { %1010 = vmatpush1.bf16.msra.mxu1 %v1009_v8  ;;  %1074 = vmatpush1.bf16.msra.mxu0 %v1073_v9 }
  0xc2   :  { %1012 = vmatprep.subr.bf16.mxu1 %v1011_v10  ;;  %1076 = vmatprep.subr.bf16.mxu0 %v1075_v14 }
  0xc5   :  { %1014 = vmatpush1.bf16.msra.mxu1 %v1013_v20  ;;  %1078 = vmatpush1.bf16.msra.mxu0 %v1077_v21 }
  0xc6   :  { %1016 = vmatprep.subr.bf16.mxu1 %v1015_v22  ;;  %1080 = vmatprep.subr.bf16.mxu0 %v1079_v26 }
  0xc9   :  { %1018 = vmatpush1.bf16.msra.mxu1 %v1017_v32  ;;  %1082 = vmatpush1.bf16.msra.mxu0 %v1081_v33 }
  0xca   :  { %1020 = vmatprep.subr.bf16.mxu1 %v1019_v34  ;;  %1084 = vmatprep.subr.bf16.mxu0 %v1083_v37 }
  0xcd   :  { %1022 = vmatpush1.bf16.msra.mxu1 %v1021_v40  ;;  %1086 = vmatpush1.bf16.msra.mxu0 %v1085_v41 }
 0x163   :  { %v298_v56 = vpop.f32.mrb[0].mxu0  ;;  %v369_v58 = vpop.f32.mrb[0].mxu1 }
 0x164   :  { %v1444_v57 = vadd.f32 %v298_v56, %v219_v52  ;;  %v300_v59 = vpop.f32.mrb[1].mxu0  ;;  %v1446_v60 = vadd.f32 %v369_v58, %v227_v53  ;;  %v371_v62 = vpop.f32.mrb[1].mxu1 }
 0x165   :  { %v1448_v61 = vadd.f32 %v300_v59, %v223_v54  ;;  %v1451_v0 = vadd.f32 %v371_v62, %v231_v55 }
 0x166   :  { %v374_v63 = vrot.slane %v1444_v57, 4  ;;  %v386_v1 = vrot.slane %v1446_v60, 4 }
 0x167   :  { %v380_v2 = vrot.slane %v1448_v61, 4  ;;  %v392_v4 = vrot.slane %v1451_v0, 4 }
 0x168   :  { %v375_v3 = vadd.f32 %v374_v63, %v1444_v57  ;;  %v387_v5 = vadd.f32 %v386_v1, %v1446_v60 }
 0x169   :  { %v381_v6 = vadd.f32 %v380_v2, %v1448_v61  ;;  %v393_v8 = vadd.f32 %v392_v4, %v1451_v0 }
 0x16a   :  { %v376_v7 = vrot.slane %v375_v3, 2  ;;  %v388_v9 = vrot.slane %v387_v5, 2 }
 0x16b   :  { %v382_v10 = vrot.slane %v381_v6, 2  ;;  %v394_v12 = vrot.slane %v393_v8, 2 }
 0x16c   :  { %v377_v11 = vadd.f32 %v376_v7, %v375_v3  ;;  %v389_v13 = vadd.f32 %v388_v9, %v387_v5 }
 0x16d   :  { %v383_v14 = vadd.f32 %v382_v10, %v381_v6  ;;  %v395_v16 = vadd.f32 %v394_v12, %v393_v8 }
 0x16e   :  { %v378_v15 = vrot.slane %v377_v11, 1  ;;  %v390_v17 = vrot.slane %v389_v13, 1 }
 0x16f   :  { %v384_v18 = vrot.slane %v383_v14, 1  ;;  %v396_v20 = vrot.slane %v395_v16, 1 }
 0x170   :  { %v379_v19 = vadd.f32 %v378_v15, %v377_v11  ;;  %v391_v21 = vadd.f32 %v390_v17, %v389_v13 }
 0x171   :  { %v385_v22 = vadd.f32 %v384_v18, %v383_v14  ;;  %v397_v24 = vadd.f32 %v396_v20, %v395_v16  ;;  %v463_v18 = vsub.s32 1, %v1432_v43 }
 0x172   :  { %v1460_v23 = vmul.f32 0.125, %v379_v19  ;;  %v1462_v25 = vmul.f32 0.125, %v391_v21  ;;  %v467_v19 = vsub.s32 5, %v1432_v43 }
 0x173   :  { %v1464_v26 = vmul.f32 0.125, %v385_v22  ;;  %v1468_v28 = vmul.f32 0.125, %v397_v24 }
 0x174   :  { %v403_v27 = vsub.f32 %v1444_v57, %v1460_v23  ;;  %v405_v29 = vsub.f32 %v1446_v60, %v1462_v25 }
 0x175   :  { %v404_v30 = vsub.f32 %v1448_v61, %v1464_v26  ;;  %v406_v32 = vsub.f32 %v1451_v0, %v1468_v28 }
 0x176   :  { %v407_v31 = vmul.f32 %v403_v27, %v403_v27  ;;  %v409_v33 = vmul.f32 %v405_v29, %v405_v29 }
 0x177   :  { %v408_v34 = vmul.f32 %v404_v30, %v404_v30  ;;  %v410_v36 = vmul.f32 %v406_v32, %v406_v32 }
 0x178   :  { %v411_v35 = vrot.slane %v407_v31, 4  ;;  %v423_v37 = vrot.slane %v409_v33, 4 }
 0x179   :  { %v417_v38 = vrot.slane %v408_v34, 4  ;;  %v429_v40 = vrot.slane %v410_v36, 4 }
 0x17a   :  { %v412_v39 = vadd.f32 %v411_v35, %v407_v31  ;;  %v424_v41 = vadd.f32 %v423_v37, %v409_v33 }
 0x17b   :  { %v418_v42 = vadd.f32 %v417_v38, %v408_v34  ;;  %v430_v46 = vadd.f32 %v429_v40, %v410_v36 }
 0x17c   :  { %v413_v44 = vrot.slane %v412_v39, 2  ;;  %v425_v48 = vrot.slane %v424_v41, 2 }
 0x17d   :  { %v419_v49 = vrot.slane %v418_v42, 2  ;;  %v431_v51 = vrot.slane %v430_v46, 2 }
 0x17e   :  { %v414_v50 = vadd.f32 %v413_v44, %v412_v39  ;;  %v426_v52 = vadd.f32 %v425_v48, %v424_v41  ;;  %v525_v48 = vsub.s32 6, %v1432_v43 }
 0x17f   :  { %v420_v53 = vadd.f32 %v419_v49, %v418_v42  ;;  %v432_v55 = vadd.f32 %v431_v51, %v430_v46 }
 0x180   :  { %v415_v54 = vrot.slane %v414_v50, 1  ;;  %v427_v56 = vrot.slane %v426_v52, 1 }
 0x181   :  { %v421_v58 = vrot.slane %v420_v53, 1  ;;  %v433_v62 = vrot.slane %v432_v55, 1 }
 0x182   :  { %v416_v59 = vadd.f32 %v415_v54, %v414_v50  ;;  %v428_v63 = vadd.f32 %v427_v56, %v426_v52 }
 0x183   :  { %v422_v1 = vadd.f32 %v421_v58, %v420_v53  ;;  %v434_v3 = vadd.f32 %v433_v62, %v432_v55 }
 0x184   :  { %v435_v2 = vmul.f32 0.125, %v416_v59  ;;  %v437_v4 = vmul.f32 0.125, %v428_v63 }
 0x185   :  { %v436_v5 = vmul.f32 0.125, %v422_v1  ;;  %v438_v7 = vmul.f32 0.125, %v434_v3  ;;  %v893_v1 = vld [vmem:[#allocation13] ss:$0 sm:$0xff] }
 0x186   :  { %v439_v6 = vadd.f32 1e-05, %v435_v2  ;;  %v441_v8 = vadd.f32 1e-05, %v437_v4 }
 0x187   :  { %v440_v9 = vadd.f32 1e-05, %v436_v5  ;;  %v442_v10 = vadd.f32 1e-05, %v438_v7  ;;  %v894_v5 = vld [vmem:[#allocation13 + $0x1] ss:$0 sm:$0xff] }
 0x188   :  { %1104 = vrsqrt.f32 %v439_v6 }
 0x189   :  { %1106 = vrsqrt.f32 %v441_v8 }
 0x18a   :  { %1108 = vrsqrt.f32 %v440_v9 }
 0x18b   :  { %1110 = vrsqrt.f32 %v442_v10 }
 0x192   :  { %v1105_v11 = vpop.eup %1104 }
 0x193   :  { %v1107_v12 = vpop.eup %1106 }
 0x194   :  { %v1109_v13 = vpop.eup %1108 }
 0x195   :  { %v1111_v14 = vpop.eup %1110  ;;  %v451_v15 = vcombine.low %v1105_v11, %v1109_v13 }
 0x196   :  { %v452_v16 = vcombine.low %v1107_v12, %v1111_v14 }
 0x197   :  { %v453_v17 = vrot.slane %v451_v15, 7 }
 0x198   :  { %v454_v20 = vrot.slane %v452_v16, 7 }
 0x199   :  { %v457_v21 = vmul.f32 %v453_v17, %v1435_v45 }
 0x19a   :  { %v458_v22 = vmul.f32 %v454_v20, %v1438_v47 }
 0x19b   :  { %v464_v24 = vrot.slane %v457_v21, %v463_v18  ;;  %v468_v27 = vrot.slane %v457_v21, %v467_v19 }
 0x19c   :  { %v472_v29 = vrot.slane %v458_v22, %v463_v18  ;;  %v476_v30 = vrot.slane %v458_v22, %v467_v19 }
 0x19d   :  { %v481_v31 = vmul.f32 %v464_v24, %v1460_v23  ;;  %v482_v32 = vmul.f32 %v468_v27, %v1464_v26  ;;  %v504_v33 = vrot.slane %v468_v27, %v463_v18  ;;  %v500_v34 = vrot.slane %v464_v24, %v463_v18 }
 0x19e   :  { %v483_v35 = vmul.f32 %v472_v29, %v1462_v25  ;;  %v484_v36 = vmul.f32 %v476_v30, %v1468_v28  ;;  %v512_v37 = vrot.slane %v476_v30, %v463_v18  ;;  %v508_v38 = vrot.slane %v472_v29, %v463_v18 }
 0x19f   :  { %v489_v39 = vcombine.low %v481_v31, %v482_v32  ;;  %v514_v40 = vmul.f32 %v504_v33, %v1448_v61  ;;  %v513_v41 = vmul.f32 %v500_v34, %v1444_v57  ;;  %v521_v26 = vsub.s32 2, %v1432_v43 }
 0x1a0   :  { %v490_v42 = vcombine.low %v483_v35, %v484_v36  ;;  %v516_v44 = vmul.f32 %v512_v37, %v1451_v0  ;;  %v515_v23 = vmul.f32 %v508_v38, %v1446_v60 }
 0x1a1   :  { %v491_v46 = vrot.slane %v489_v39, 6 }
 0x1a2   :  { %v492_v25 = vrot.slane %v490_v42, 6 }
 0x1a3   :  { %v495_v28 = vsub.f32 %v1435_v45, %v491_v46 }
 0x1a4   :  { %v496_v49 = vsub.f32 %v1438_v47, %v492_v25 }
 0x1a5   :  { %v526_v50 = vrot.slane %v495_v28, %v525_v48  ;;  %v522_v51 = vrot.slane %v495_v28, %v521_v26 }
 0x1a6   :  { %v534_v61 = vrot.slane %v496_v49, %v525_v48  ;;  %v530_v52 = vrot.slane %v496_v49, %v521_v26 }
 0x1a7   :  { %v546_v57 = vrot.slane %v526_v50, %v521_v26  ;;  %v542_v53 = vrot.slane %v522_v51, %v521_v26 }
 0x1a8   :  { %v554_v54 = vrot.slane %v534_v61, %v521_v26  ;;  %v550_v0 = vrot.slane %v530_v52, %v521_v26 }
 0x1a9   :  { %v556_v55 = vadd.f32 %v546_v57, %v514_v40  ;;  %v555_v60 = vadd.f32 %v542_v53, %v513_v41 }
 0x1aa   :  { %v558_v56 = vadd.f32 %v554_v54, %v516_v44  ;;  %v557_v58 = vadd.f32 %v550_v0, %v515_v23 }
 0x1ab   :  { %v560_v59 = vmax.f32 %v556_v55, 0.0  ;;  %v559_v62 = vmax.f32 %v555_v60, 0.0 }
 0x1ac   :  { %v562_v43 = vmax.f32 %v558_v56, 0.0  ;;  %v561_v63 = vmax.f32 %v557_v58, 0.0 }
 0x1ad   :  { %755 = vmatprep.mubr.f32.mxu1 %v560_v59 }
 0x1ae   :  { %826 = vmatprep.mubr.f32.mxu0 %v562_v43  ;;  %756 = vmatmul.mubr.f32.vlgmr.msra.gmra.mrb[2].mxu1 %v559_v62 }
 0x1af   :  { %827 = vmatmul.mubr.f32.vlgmr.msra.gmra.mrb[2].mxu0 %v561_v63 }
 0x281   :  { %v757_v45 = vpop.f32.mrb[2].mxu1 }
 0x282   :  { %v828_v47 = vpop.f32.mrb[2].mxu0  ;;  %v759_v2 = vpop.f32.mrb[3].mxu1 }
 0x283   :  { %v829_v3 = vadd.f32 %v828_v47, %v757_v45  ;;  %v830_v4 = vpop.f32.mrb[3].mxu0 }
 0x284   :  { %v831_v6 = vadd.f32 %v830_v4, %v759_v2 }
 0x285   :  { %v838_v7 = vadd.f32 %v893_v1, %v829_v3 }
 0x286   :  { %v845_v8 = vadd.f32 %v894_v5, %v831_v6 }
 0x287   :  { %839 = vst [vmem:[#allocation14] sm:$0xff] %v838_v7 }
 0x288   :  { %846 = vst [vmem:[#allocation15] sm:$0xff] %v845_v8 }
 0x289   :  { %1245 = shalt.err (!%p1242_p7)
}
 0x28a   :  { %s1246_s13 = scalar_lea.hbm %s1522_s6, 128 }
 0x28b   :  { %p1247_p8 = scmp.ne.s32.totalorder %s1522_s6, %s1246_s13  ;;  %p1250_p9 = scmp.lt.u32.totalorder %s1246_s13, %s1522_s6 }
 0x28d   :  { %p1252_p10 = pnand %p1250_p9, %p1247_p8 }
 0x28f   :  { %1255 = shalt.err (!%p1252_p10)
}
 0x290   :  { %856 = dma.vmem_to_hbm [thread:$0]  %s854_s30, 128, %s1522_s6, [#allocation7]  }
 0x291   :  { %s1256_s4 = scalar_lea.vmem %s864_s9, 128  ;;  %p1261_p12 = scmp.lt.s32.totalorder %s864_s9, %s864_s9 }
 0x292   :  { %p1257_p11 = scmp.ne.s32.totalorder %s864_s9, %s1256_s4  ;;  %p1262_p13 = scmp.lt.s32.totalorder %s1256_s4, %s1256_s4 }
 0x294   :  { %p1263_p0 = por %p1262_p13, %p1261_p12 }
 0x296   :  { %p1264_p1 = pnand %p1263_p0, %p1257_p11 }
 0x298   :  { %1267 = shalt.err (!%p1264_p1)
}
 0x299   :  { %s1268_s20 = scalar_lea.hbm %s1523_s7, 128 }
 0x29a   :  { %p1269_p2 = scmp.ne.s32.totalorder %s1523_s7, %s1268_s20  ;;  %p1272_p3 = scmp.lt.u32.totalorder %s1268_s20, %s1523_s7 }
 0x29c   :  { %p1274_p4 = pnand %p1272_p3, %p1269_p2 }
 0x29e   :  { %1277 = shalt.err (!%p1274_p4)
}
 0x29f   :  { %866 = dma.vmem_to_hbm [thread:$0]  %s864_s9, 128, %s1523_s7, [#allocation16]  }
 0x2a0   :  { %1286 = dma.done.wait [#allocation7], 128  }
 0x2a1   :  { %1287 = vsyncadd [#allocation7], 4294967168 }
 0x2a2   :  { %1288 = dma.done.wait [#allocation16], 128  }
 0x2a3   :  { %1289 = vsyncadd [#allocation16], 4294967168 }
 0x2a4   :  { %873 = vsyncpa [#allocation6], 1 }
 0x2a5   :  { %874 = vsyncpa [#allocation9], 1 }
 0x2a6   :  { %875 = vsyncpa [#allocation12], 1 }
 0x2a7   :  { %876 = vsyncpa [#allocation7], 1 }
 0x2a8   :  { %877 = vsyncpa [#allocation16], 1 }

</bundles_post_ra>
